<compile_context>
chip_gen: v7x
topology: tpu7x:2x2x1
jax: 0.10.0
libtpu: 0.0.40
codegen_flags: <defaults>
</compile_context>

<pallas_src>
import functools
import math

import jax
import jax.numpy as jnp
from jax.experimental import pallas as pl
from jax.experimental.pallas import tpu as pltpu


ENC_NPARAMS = 12   # wqkv,bqkv,wo,bo,w1,b1,w2,b2,g1,be1,g2,be2
DEC_NPARAMS = 20   # swqkv,sbqkv,swo,sbo,cwq,cbq,cwkv,cbkv,cwo,cbo,w1,b1,w2,b2,g1,be1,g2,be2,g3,be3
HEAD_NPARAMS = 4   # fc_w, fc_b, head_w, head_b


# ----------------------------- in-kernel helpers -----------------------------

def _layernorm(x, gamma, beta, eps=1e-5):
    mu = jnp.mean(x, axis=-1, keepdims=True)
    xc = x - mu                                           # centered once, reused
    var = jnp.mean(xc * xc, axis=-1, keepdims=True)
    return xc * (jax.lax.rsqrt(var + eps) * gamma) + beta


def _head_attention(q, k, v, wo, bo, key_bias, head_num):
    """q,k,v: already-projected (Vq, D), (Vk, D), (Vk, D); heads batched on a leading dim."""
    Vq, D = q.shape
    hd = D // head_num
    # fold the softmax scale into q once (whole (Vq, D) slab, before per-head slicing)
    q = q * (1.0 / math.sqrt(hd))
    # (H, Vq, hd) / (H, Vk, hd): stack per-head lane slices along a leading (untiled) dim.
    qs = jnp.stack([q[:, h * hd:(h + 1) * hd] for h in range(head_num)], axis=0)
    ks = jnp.stack([k[:, h * hd:(h + 1) * hd] for h in range(head_num)], axis=0)
    vs = jnp.stack([v[:, h * hd:(h + 1) * hd] for h in range(head_num)], axis=0)
    # one batched QK^T, one softmax pass for all heads
    s = jnp.einsum('hqd,hkd->hqk', qs, ks, preferred_element_type=jnp.float32)
    if key_bias is not None:
        s = s + key_bias[None]                       # (1, 1, Vk) additive key-padding mask
    s = s - jnp.max(s, axis=-1, keepdims=True)
    p = jnp.exp(s)
    p = p * pl.reciprocal(jnp.sum(p, axis=-1, keepdims=True), approx=True)
    # one batched PV matmul
    o = jnp.einsum('hqk,hkd->hqd', p, vs, preferred_element_type=jnp.float32)   # (H, Vq, hd)
    # lane-concat heads -> single K=D output projection
    o = jnp.concatenate([o[h] for h in range(head_num)], axis=-1)               # (Vq, D)
    return jnp.dot(o, wo, preferred_element_type=jnp.float32) + bo


def _self_attention(x, wqkv, bqkv, wo, bo, key_bias, head_num):
    D = x.shape[-1]
    qkv = jnp.dot(x, wqkv, preferred_element_type=jnp.float32) + bqkv           # (V, 3D)
    return _head_attention(qkv[:, :D], qkv[:, D:2 * D], qkv[:, 2 * D:],
                           wo, bo, key_bias, head_num)


def _cross_attention(x, mem, wq, bq, wkv, bkv, wo, bo, key_bias, head_num):
    D = x.shape[-1]
    q = jnp.dot(x, wq, preferred_element_type=jnp.float32) + bq                 # (V, D)
    kv = jnp.dot(mem, wkv, preferred_element_type=jnp.float32) + bkv            # (V, 2D)
    return _head_attention(q, kv[:, :D], kv[:, D:], wo, bo, key_bias, head_num)


def _ffn(x, w1, b1, w2, b2):
    h = jnp.maximum(jnp.dot(x, w1, preferred_element_type=jnp.float32) + b1, 0.0)
    return jnp.dot(h, w2, preferred_element_type=jnp.float32) + b2


# ----------------------------- fused whole-network kernel -----------------------------

def transformer_kernel(x_ref, kmask_ref, vmask_ref, *refs, head_num, n_enc, n_dec):
    n_w = n_enc * ENC_NPARAMS + n_dec * DEC_NPARAMS + HEAD_NPARAMS
    w = refs[:n_w]
    o_ref = refs[n_w]

    x = x_ref[0]                    # (V, D)
    kbias = kmask_ref[0]            # (1, V) additive key-padding bias (-1e30 on padded visits)
    vm = vmask_ref[0]               # (V, 1) 1.0 for valid visits

    pos = 0

    def take(n):
        nonlocal pos
        vals = tuple(r[...] for r in w[pos:pos + n])
        pos += n
        return vals

    # ---- encoder stack (post-LN, ReLU FFN, src_key_padding_mask) ----
    for _ in range(n_enc):
        wqkv, bqkv, wo, bo, w1, b1, w2, b2, g1, be1, g2, be2 = take(ENC_NPARAMS)
        x = _layernorm(x + _self_attention(x, wqkv, bqkv, wo, bo, kbias, head_num), g1, be1)
        x = _layernorm(x + _ffn(x, w1, b1, w2, b2), g2, be2)

    # ---- decoder stack (tgt = memory = encoder output; no memory_key_padding_mask) ----
    mem = x
    for _ in range(n_dec):
        (swqkv, sbqkv, swo, sbo, cwq, cbq, cwkv, cbkv, cwo, cbo,
         w1, b1, w2, b2, g1, be1, g2, be2, g3, be3) = take(DEC_NPARAMS)
        x = _layernorm(x + _self_attention(x, swqkv, sbqkv, swo, sbo, kbias, head_num),
                       g1, be1)
        x = _layernorm(x + _cross_attention(x, mem, cwq, cbq, cwkv, cbkv, cwo, cbo,
                                            None, head_num), g2, be2)
        x = _layernorm(x + _ffn(x, w1, b1, w2, b2), g3, be3)

    # ---- fc -> masked mean pool over visits -> head ----
    fc_w, fc_b, head_w, head_b = take(HEAD_NPARAMS)
    y = (jnp.dot(x, fc_w, preferred_element_type=jnp.float32) + fc_b) * vm      # (V, E)
    pooled = jnp.sum(y, axis=0, keepdims=True)                                  # (1, E)
    cnt = jnp.maximum(jnp.sum(vm, keepdims=True), 1.0)                          # (1, 1) clamp(min=1)
    pooled = pooled * pl.reciprocal(cnt, approx=True)
    out = jnp.dot(pooled, head_w, preferred_element_type=jnp.float32) + head_b  # (1, out_dim)
    o_ref[0] = out.astype(o_ref.dtype)


# ----------------------------- pallas_call wrapper -----------------------------

def _batch_spec(arr):
    nd = arr.ndim
    return pl.BlockSpec((1,) + arr.shape[1:], lambda b, _nd=nd: (b,) + (0,) * (_nd - 1))


def _const_spec(arr):
    nd = arr.ndim
    return pl.BlockSpec(arr.shape, lambda b, _nd=nd: (0,) * _nd)


def run_transformer(x, kmask, vmask, params, head_num):
    B, V, D = x.shape
    assert D % head_num == 0
    out_dim = params['head_w'].shape[1]
    enc_layers = params['encoder_layers']
    dec_layers = params['decoder_layers']

    weights = []
    for p in enc_layers:
        weights += [p['wqkv'], p['bqkv'], p['wo'], p['bo'], p['w1'], p['b1'],
                    p['w2'], p['b2'], p['g1'], p['be1'], p['g2'], p['be2']]
    for p in dec_layers:
        weights += [p['swqkv'], p['sbqkv'], p['swo'], p['sbo'],
                    p['cwq'], p['cbq'], p['cwkv'], p['cbkv'], p['cwo'], p['cbo'],
                    p['w1'], p['b1'], p['w2'], p['b2'],
                    p['g1'], p['be1'], p['g2'], p['be2'], p['g3'], p['be3']]
    weights += [params['fc_w'], params['fc_b'], params['head_w'], params['head_b']]

    kernel = functools.partial(transformer_kernel, head_num=head_num,
                               n_enc=len(enc_layers), n_dec=len(dec_layers))
    out = pl.pallas_call(
        kernel,
        out_shape=jax.ShapeDtypeStruct((B, 1, out_dim), jnp.float32),
        grid=(B,),
        in_specs=[_batch_spec(x), _batch_spec(kmask), _batch_spec(vmask)]
                 + [_const_spec(w) for w in weights],
        out_specs=pl.BlockSpec((1, 1, out_dim), lambda b: (b, 0, 0)),
        compiler_params=pltpu.CompilerParams(dimension_semantics=("parallel",)),
    )(x, kmask, vmask, *weights)
    return out.reshape(B, out_dim)


# ----------------------------- full forward -----------------------------

def transformer_forward(params, node_ids, edge_idx, edge_attr, visit_times,
                        visit_order, attn_mask, *, head_num):
    # edge_idx / edge_attr / visit_times / visit_order are unused by the reference forward.
    B, V, N = node_ids.shape
    input_dim = params['node_embed'].shape[1]

    # embedding lookup == expand + gather in the reference (plain-JAX glue)
    x = params['node_embed'][node_ids]                       # (B, V, N, input_dim)
    x = x.reshape(B, V, N * input_dim).astype(jnp.float32)   # (B, V, D)

    visit_mask = jnp.all(attn_mask, axis=-1)                 # (B, V), True = padded visit
    kmask = jnp.where(visit_mask, jnp.float32(-1e30), jnp.float32(0.0)).reshape(B, 1, V)
    vmask = (~visit_mask).astype(jnp.float32).reshape(B, V, 1)

    out = run_transformer(x, kmask, vmask, params, head_num)
    return {'logits': [out], 'prototypes': None, 'embeddings': None, 'scores': None}


# ----------------------------- parameter init -----------------------------

def init_params(key, *, num_nodes, input_dim, visit_code_num, ff_dim,
                encoder_depth, decoder_depth, out_dim):
    D = visit_code_num * input_dim
    keys = iter(jax.random.split(key, 512))

    def dense(fi, fo):
        return jax.random.normal(next(keys), (fi, fo), jnp.float32) / math.sqrt(fi)

    def bias(n):
        return jax.random.normal(next(keys), (1, n), jnp.float32) * 0.01

    def enc_layer():
        return dict(
            wqkv=dense(D, 3 * D), bqkv=bias(3 * D),              # fused in-projection
            wo=dense(D, D), bo=bias(D),
            w1=dense(D, ff_dim), b1=bias(ff_dim), w2=dense(ff_dim, D), b2=bias(D),
            g1=jnp.ones((1, D), jnp.float32), be1=jnp.zeros((1, D), jnp.float32),
            g2=jnp.ones((1, D), jnp.float32), be2=jnp.zeros((1, D), jnp.float32),
        )

    def dec_layer():
        return dict(
            swqkv=dense(D, 3 * D), sbqkv=bias(3 * D),            # fused self-attn in-projection
            swo=dense(D, D), sbo=bias(D),
            cwq=dense(D, D), cbq=bias(D),
            cwkv=dense(D, 2 * D), cbkv=bias(2 * D),              # fused cross-attn K/V
            cwo=dense(D, D), cbo=bias(D),
            w1=dense(D, ff_dim), b1=bias(ff_dim), w2=dense(ff_dim, D), b2=bias(D),
            g1=jnp.ones((1, D), jnp.float32), be1=jnp.zeros((1, D), jnp.float32),
            g2=jnp.ones((1, D), jnp.float32), be2=jnp.zeros((1, D), jnp.float32),
            g3=jnp.ones((1, D), jnp.float32), be3=jnp.zeros((1, D), jnp.float32),
        )

    node_embed = jax.random.normal(next(keys), (num_nodes + 1, input_dim), jnp.float32)
    node_embed = node_embed.at[0].set(0.0)   # padding_idx=0

    return dict(
        node_embed=node_embed,
        encoder_layers=[enc_layer() for _ in range(encoder_depth)],
        decoder_layers=[dec_layer() for _ in range(decoder_depth)],
        fc_w=dense(D, input_dim), fc_b=bias(input_dim),
        head_w=dense(input_dim, out_dim), head_b=bias(out_dim),
    )


# ----------------------------- main -----------------------------

if __name__ == "__main__":
    args = dict(num_nodes=20, visit_thresh=8, visit_code_num=4,
                start_embed_dim=8, input_dim=8,       # start_embed_dim == input_dim (required by fc)
                ff_dim=64, head_num=4,
                encoder_depth=1, decoder_depth=1, out_dim=5)
    B, V, N = 2, args['visit_thresh'], args['visit_code_num']

    key = jax.random.PRNGKey(0)
    kparam, kdata = jax.random.split(key)
    params = init_params(kparam,
                         num_nodes=args['num_nodes'], input_dim=args['input_dim'],
                         visit_code_num=args['visit_code_num'], ff_dim=args['ff_dim'],
                         encoder_depth=args['encoder_depth'],
                         decoder_depth=args['decoder_depth'], out_dim=args['out_dim'])

    k1, k2 = jax.random.split(kdata)
    node_ids = jax.random.randint(k1, (B, V, N), 0, args['num_nodes'] + 1, dtype=jnp.int32)
    valid_len = jnp.array([6, 5], dtype=jnp.int32)          # visits >= valid_len are padded
    v_idx = jnp.arange(V, dtype=jnp.int32)
    attn_mask = jnp.broadcast_to((v_idx[None, :, None] >= valid_len[:, None, None]), (B, V, N))
    # unused-by-forward inputs (kept for interface fidelity)
    edge_idx = jnp.zeros((2, 1), jnp.int32)
    edge_attr = jnp.zeros((1, 1), jnp.float32)
    visit_times = jnp.zeros((B, V), jnp.int32)
    visit_order = jnp.zeros((B, V), jnp.int32)

    forward = jax.jit(transformer_forward, static_argnames=('head_num',))
    result = forward(params, node_ids, edge_idx, edge_attr,
                     visit_times, visit_order, attn_mask,
                     head_num=args['head_num'])
    logits = jax.block_until_ready(result['logits'][0])

    assert logits.shape == (B, args['out_dim']), logits.shape
    assert bool(jnp.all(jnp.isfinite(logits)))
    print("KERNEL_OK")
</pallas_src>

<mosaic_0001>
module attributes {stable_mosaic.version = 11 : i64} {
  func.func @transformer_kernel(%arg0: i32, %arg1: memref<1x8x32xf32, #tpu.memory_space<vmem>>, %arg2: memref<1x1x8xf32, #tpu.memory_space<vmem>>, %arg3: memref<1x8x1xf32, #tpu.memory_space<vmem>>, %arg4: memref<32x96xf32, #tpu.memory_space<vmem>>, %arg5: memref<1x96xf32, #tpu.memory_space<vmem>>, %arg6: memref<32x32xf32, #tpu.memory_space<vmem>>, %arg7: memref<1x32xf32, #tpu.memory_space<vmem>>, %arg8: memref<32x64xf32, #tpu.memory_space<vmem>>, %arg9: memref<1x64xf32, #tpu.memory_space<vmem>>, %arg10: memref<64x32xf32, #tpu.memory_space<vmem>>, %arg11: memref<1x32xf32, #tpu.memory_space<vmem>>, %arg12: memref<1x32xf32, #tpu.memory_space<vmem>>, %arg13: memref<1x32xf32, #tpu.memory_space<vmem>>, %arg14: memref<1x32xf32, #tpu.memory_space<vmem>>, %arg15: memref<1x32xf32, #tpu.memory_space<vmem>>, %arg16: memref<32x96xf32, #tpu.memory_space<vmem>>, %arg17: memref<1x96xf32, #tpu.memory_space<vmem>>, %arg18: memref<32x32xf32, #tpu.memory_space<vmem>>, %arg19: memref<1x32xf32, #tpu.memory_space<vmem>>, %arg20: memref<32x32xf32, #tpu.memory_space<vmem>>, %arg21: memref<1x32xf32, #tpu.memory_space<vmem>>, %arg22: memref<32x64xf32, #tpu.memory_space<vmem>>, %arg23: memref<1x64xf32, #tpu.memory_space<vmem>>, %arg24: memref<32x32xf32, #tpu.memory_space<vmem>>, %arg25: memref<1x32xf32, #tpu.memory_space<vmem>>, %arg26: memref<32x64xf32, #tpu.memory_space<vmem>>, %arg27: memref<1x64xf32, #tpu.memory_space<vmem>>, %arg28: memref<64x32xf32, #tpu.memory_space<vmem>>, %arg29: memref<1x32xf32, #tpu.memory_space<vmem>>, %arg30: memref<1x32xf32, #tpu.memory_space<vmem>>, %arg31: memref<1x32xf32, #tpu.memory_space<vmem>>, %arg32: memref<1x32xf32, #tpu.memory_space<vmem>>, %arg33: memref<1x32xf32, #tpu.memory_space<vmem>>, %arg34: memref<1x32xf32, #tpu.memory_space<vmem>>, %arg35: memref<1x32xf32, #tpu.memory_space<vmem>>, %arg36: memref<32x8xf32, #tpu.memory_space<vmem>>, %arg37: memref<1x8xf32, #tpu.memory_space<vmem>>, %arg38: memref<8x5xf32, #tpu.memory_space<vmem>>, %arg39: memref<1x5xf32, #tpu.memory_space<vmem>>, %arg40: memref<1x1x5xf32, #tpu.memory_space<vmem>>) attributes {dimension_semantics = [#tpu.dimension_semantics<parallel>], iteration_bounds = array<i64: 2>, scalar_prefetch = 0 : i64, scratch_operands = 0 : i64, tpu.core_type = #tpu.core_type<tc>, window_params = [{transform_indices = @transform_0, window_bounds = array<i64: 1, 8, 32>}, {transform_indices = @transform_1, window_bounds = array<i64: 1, 1, 8>}, {transform_indices = @transform_2, window_bounds = array<i64: 1, 8, 1>}, {pipeline_mode = #tpu.pipeline_mode<synchronous>, transform_indices = @transform_3, window_bounds = array<i64: 32, 96>}, {pipeline_mode = #tpu.pipeline_mode<synchronous>, transform_indices = @transform_4, window_bounds = array<i64: 1, 96>}, {pipeline_mode = #tpu.pipeline_mode<synchronous>, transform_indices = @transform_5, window_bounds = array<i64: 32, 32>}, {pipeline_mode = #tpu.pipeline_mode<synchronous>, transform_indices = @transform_6, window_bounds = array<i64: 1, 32>}, {pipeline_mode = #tpu.pipeline_mode<synchronous>, transform_indices = @transform_7, window_bounds = array<i64: 32, 64>}, {pipeline_mode = #tpu.pipeline_mode<synchronous>, transform_indices = @transform_8, window_bounds = array<i64: 1, 64>}, {pipeline_mode = #tpu.pipeline_mode<synchronous>, transform_indices = @transform_9, window_bounds = array<i64: 64, 32>}, {pipeline_mode = #tpu.pipeline_mode<synchronous>, transform_indices = @transform_10, window_bounds = array<i64: 1, 32>}, {pipeline_mode = #tpu.pipeline_mode<synchronous>, transform_indices = @transform_11, window_bounds = array<i64: 1, 32>}, {pipeline_mode = #tpu.pipeline_mode<synchronous>, transform_indices = @transform_12, window_bounds = array<i64: 1, 32>}, {pipeline_mode = #tpu.pipeline_mode<synchronous>, transform_indices = @transform_13, window_bounds = array<i64: 1, 32>}, {pipeline_mode = #tpu.pipeline_mode<synchronous>, transform_indices = @transform_14, window_bounds = array<i64: 1, 32>}, {pipeline_mode = #tpu.pipeline_mode<synchronous>, transform_indices = @transform_15, window_bounds = array<i64: 32, 96>}, {pipeline_mode = #tpu.pipeline_mode<synchronous>, transform_indices = @transform_16, window_bounds = array<i64: 1, 96>}, {pipeline_mode = #tpu.pipeline_mode<synchronous>, transform_indices = @transform_17, window_bounds = array<i64: 32, 32>}, {pipeline_mode = #tpu.pipeline_mode<synchronous>, transform_indices = @transform_18, window_bounds = array<i64: 1, 32>}, {pipeline_mode = #tpu.pipeline_mode<synchronous>, transform_indices = @transform_19, window_bounds = array<i64: 32, 32>}, {pipeline_mode = #tpu.pipeline_mode<synchronous>, transform_indices = @transform_20, window_bounds = array<i64: 1, 32>}, {pipeline_mode = #tpu.pipeline_mode<synchronous>, transform_indices = @transform_21, window_bounds = array<i64: 32, 64>}, {pipeline_mode = #tpu.pipeline_mode<synchronous>, transform_indices = @transform_22, window_bounds = array<i64: 1, 64>}, {pipeline_mode = #tpu.pipeline_mode<synchronous>, transform_indices = @transform_23, window_bounds = array<i64: 32, 32>}, {pipeline_mode = #tpu.pipeline_mode<synchronous>, transform_indices = @transform_24, window_bounds = array<i64: 1, 32>}, {pipeline_mode = #tpu.pipeline_mode<synchronous>, transform_indices = @transform_25, window_bounds = array<i64: 32, 64>}, {pipeline_mode = #tpu.pipeline_mode<synchronous>, transform_indices = @transform_26, window_bounds = array<i64: 1, 64>}, {pipeline_mode = #tpu.pipeline_mode<synchronous>, transform_indices = @transform_27, window_bounds = array<i64: 64, 32>}, {pipeline_mode = #tpu.pipeline_mode<synchronous>, transform_indices = @transform_28, window_bounds = array<i64: 1, 32>}, {pipeline_mode = #tpu.pipeline_mode<synchronous>, transform_indices = @transform_29, window_bounds = array<i64: 1, 32>}, {pipeline_mode = #tpu.pipeline_mode<synchronous>, transform_indices = @transform_30, window_bounds = array<i64: 1, 32>}, {pipeline_mode = #tpu.pipeline_mode<synchronous>, transform_indices = @transform_31, window_bounds = array<i64: 1, 32>}, {pipeline_mode = #tpu.pipeline_mode<synchronous>, transform_indices = @transform_32, window_bounds = array<i64: 1, 32>}, {pipeline_mode = #tpu.pipeline_mode<synchronous>, transform_indices = @transform_33, window_bounds = array<i64: 1, 32>}, {pipeline_mode = #tpu.pipeline_mode<synchronous>, transform_indices = @transform_34, window_bounds = array<i64: 1, 32>}, {pipeline_mode = #tpu.pipeline_mode<synchronous>, transform_indices = @transform_35, window_bounds = array<i64: 32, 8>}, {pipeline_mode = #tpu.pipeline_mode<synchronous>, transform_indices = @transform_36, window_bounds = array<i64: 1, 8>}, {pipeline_mode = #tpu.pipeline_mode<synchronous>, transform_indices = @transform_37, window_bounds = array<i64: 8, 5>}, {pipeline_mode = #tpu.pipeline_mode<synchronous>, transform_indices = @transform_38, window_bounds = array<i64: 1, 5>}, {transform_indices = @transform_39, window_bounds = array<i64: 1, 1, 5>}]} {
    %c0 = arith.constant 0 : index
    %c0_0 = arith.constant 0 : index
    %c0_1 = arith.constant 0 : index
    %0 = vector.load %arg1[%c0, %c0_0, %c0_1] : memref<1x8x32xf32, #tpu.memory_space<vmem>>, vector<1x8x32xf32>
    %1 = vector.shape_cast %0 : vector<1x8x32xf32> to vector<8x32xf32>
    %c0_2 = arith.constant 0 : index
    %c0_3 = arith.constant 0 : index
    %c0_4 = arith.constant 0 : index
    %2 = vector.load %arg2[%c0_2, %c0_3, %c0_4] : memref<1x1x8xf32, #tpu.memory_space<vmem>>, vector<1x1x8xf32>
    %3 = vector.shape_cast %2 : vector<1x1x8xf32> to vector<1x8xf32>
    %c0_5 = arith.constant 0 : index
    %c0_6 = arith.constant 0 : index
    %c0_7 = arith.constant 0 : index
    %4 = vector.load %arg3[%c0_5, %c0_6, %c0_7] : memref<1x8x1xf32, #tpu.memory_space<vmem>>, vector<1x8x1xf32>
    %5 = vector.shape_cast %4 : vector<1x8x1xf32> to vector<8x1xf32>
    %c0_8 = arith.constant 0 : index
    %c0_9 = arith.constant 0 : index
    %6 = vector.load %arg4[%c0_8, %c0_9] : memref<32x96xf32, #tpu.memory_space<vmem>>, vector<32x96xf32>
    %c0_10 = arith.constant 0 : index
    %c0_11 = arith.constant 0 : index
    %7 = vector.load %arg5[%c0_10, %c0_11] : memref<1x96xf32, #tpu.memory_space<vmem>>, vector<1x96xf32>
    %c0_12 = arith.constant 0 : index
    %c0_13 = arith.constant 0 : index
    %8 = vector.load %arg6[%c0_12, %c0_13] : memref<32x32xf32, #tpu.memory_space<vmem>>, vector<32x32xf32>
    %c0_14 = arith.constant 0 : index
    %c0_15 = arith.constant 0 : index
    %9 = vector.load %arg7[%c0_14, %c0_15] : memref<1x32xf32, #tpu.memory_space<vmem>>, vector<1x32xf32>
    %c0_16 = arith.constant 0 : index
    %c0_17 = arith.constant 0 : index
    %10 = vector.load %arg8[%c0_16, %c0_17] : memref<32x64xf32, #tpu.memory_space<vmem>>, vector<32x64xf32>
    %c0_18 = arith.constant 0 : index
    %c0_19 = arith.constant 0 : index
    %11 = vector.load %arg9[%c0_18, %c0_19] : memref<1x64xf32, #tpu.memory_space<vmem>>, vector<1x64xf32>
    %c0_20 = arith.constant 0 : index
    %c0_21 = arith.constant 0 : index
    %12 = vector.load %arg10[%c0_20, %c0_21] : memref<64x32xf32, #tpu.memory_space<vmem>>, vector<64x32xf32>
    %c0_22 = arith.constant 0 : index
    %c0_23 = arith.constant 0 : index
    %13 = vector.load %arg11[%c0_22, %c0_23] : memref<1x32xf32, #tpu.memory_space<vmem>>, vector<1x32xf32>
    %c0_24 = arith.constant 0 : index
    %c0_25 = arith.constant 0 : index
    %14 = vector.load %arg12[%c0_24, %c0_25] : memref<1x32xf32, #tpu.memory_space<vmem>>, vector<1x32xf32>
    %c0_26 = arith.constant 0 : index
    %c0_27 = arith.constant 0 : index
    %15 = vector.load %arg13[%c0_26, %c0_27] : memref<1x32xf32, #tpu.memory_space<vmem>>, vector<1x32xf32>
    %c0_28 = arith.constant 0 : index
    %c0_29 = arith.constant 0 : index
    %16 = vector.load %arg14[%c0_28, %c0_29] : memref<1x32xf32, #tpu.memory_space<vmem>>, vector<1x32xf32>
    %c0_30 = arith.constant 0 : index
    %c0_31 = arith.constant 0 : index
    %17 = vector.load %arg15[%c0_30, %c0_31] : memref<1x32xf32, #tpu.memory_space<vmem>>, vector<1x32xf32>
    %cst = arith.constant dense<0.000000e+00> : vector<8x96xf32>
    %18 = tpu.matmul %1, %6, %cst {dimension_numbers = #tpu.dot_dimension_numbers<[1], [0], [0], [1], [0, 0, 1, 1], [], []>} : vector<8x32xf32>, vector<32x96xf32>, vector<8x96xf32> -> vector<8x96xf32>
    %19 = vector.broadcast %7 : vector<1x96xf32> to vector<8x96xf32>
    %20 = arith.addf %18, %19 : vector<8x96xf32>
    %21 = vector.extract_strided_slice %20 {offsets = [0, 0], sizes = [8, 32], strides = [1, 1]} : vector<8x96xf32> to vector<8x32xf32>
    %22 = vector.extract_strided_slice %20 {offsets = [0, 32], sizes = [8, 32], strides = [1, 1]} : vector<8x96xf32> to vector<8x32xf32>
    %23 = vector.extract_strided_slice %20 {offsets = [0, 64], sizes = [8, 32], strides = [1, 1]} : vector<8x96xf32> to vector<8x32xf32>
    %cst_32 = arith.constant 0.353553385 : f32
    %24 = vector.broadcast %cst_32 : f32 to vector<8x32xf32>
    %25 = arith.mulf %21, %24 : vector<8x32xf32>
    %26 = vector.extract_strided_slice %25 {offsets = [0, 0], sizes = [8, 8], strides = [1, 1]} : vector<8x32xf32> to vector<8x8xf32>
    %27 = vector.extract_strided_slice %25 {offsets = [0, 8], sizes = [8, 8], strides = [1, 1]} : vector<8x32xf32> to vector<8x8xf32>
    %28 = vector.extract_strided_slice %25 {offsets = [0, 16], sizes = [8, 8], strides = [1, 1]} : vector<8x32xf32> to vector<8x8xf32>
    %29 = vector.extract_strided_slice %25 {offsets = [0, 24], sizes = [8, 8], strides = [1, 1]} : vector<8x32xf32> to vector<8x8xf32>
    %30 = vector.shape_cast %26 : vector<8x8xf32> to vector<1x8x8xf32>
    %31 = vector.shape_cast %27 : vector<8x8xf32> to vector<1x8x8xf32>
    %32 = vector.shape_cast %28 : vector<8x8xf32> to vector<1x8x8xf32>
    %33 = vector.shape_cast %29 : vector<8x8xf32> to vector<1x8x8xf32>
    %34 = tpu.concatenate %30, %31, %32, %33 in 0 : vector<1x8x8xf32>, vector<1x8x8xf32>, vector<1x8x8xf32>, vector<1x8x8xf32> -> vector<4x8x8xf32>
    %35 = vector.extract_strided_slice %22 {offsets = [0, 0], sizes = [8, 8], strides = [1, 1]} : vector<8x32xf32> to vector<8x8xf32>
    %36 = vector.extract_strided_slice %22 {offsets = [0, 8], sizes = [8, 8], strides = [1, 1]} : vector<8x32xf32> to vector<8x8xf32>
    %37 = vector.extract_strided_slice %22 {offsets = [0, 16], sizes = [8, 8], strides = [1, 1]} : vector<8x32xf32> to vector<8x8xf32>
    %38 = vector.extract_strided_slice %22 {offsets = [0, 24], sizes = [8, 8], strides = [1, 1]} : vector<8x32xf32> to vector<8x8xf32>
    %39 = vector.shape_cast %35 : vector<8x8xf32> to vector<1x8x8xf32>
    %40 = vector.shape_cast %36 : vector<8x8xf32> to vector<1x8x8xf32>
    %41 = vector.shape_cast %37 : vector<8x8xf32> to vector<1x8x8xf32>
    %42 = vector.shape_cast %38 : vector<8x8xf32> to vector<1x8x8xf32>
    %43 = tpu.concatenate %39, %40, %41, %42 in 0 : vector<1x8x8xf32>, vector<1x8x8xf32>, vector<1x8x8xf32>, vector<1x8x8xf32> -> vector<4x8x8xf32>
    %44 = vector.extract_strided_slice %23 {offsets = [0, 0], sizes = [8, 8], strides = [1, 1]} : vector<8x32xf32> to vector<8x8xf32>
    %45 = vector.extract_strided_slice %23 {offsets = [0, 8], sizes = [8, 8], strides = [1, 1]} : vector<8x32xf32> to vector<8x8xf32>
    %46 = vector.extract_strided_slice %23 {offsets = [0, 16], sizes = [8, 8], strides = [1, 1]} : vector<8x32xf32> to vector<8x8xf32>
    %47 = vector.extract_strided_slice %23 {offsets = [0, 24], sizes = [8, 8], strides = [1, 1]} : vector<8x32xf32> to vector<8x8xf32>
    %48 = vector.shape_cast %44 : vector<8x8xf32> to vector<1x8x8xf32>
    %49 = vector.shape_cast %45 : vector<8x8xf32> to vector<1x8x8xf32>
    %50 = vector.shape_cast %46 : vector<8x8xf32> to vector<1x8x8xf32>
    %51 = vector.shape_cast %47 : vector<8x8xf32> to vector<1x8x8xf32>
    %52 = tpu.concatenate %48, %49, %50, %51 in 0 : vector<1x8x8xf32>, vector<1x8x8xf32>, vector<1x8x8xf32>, vector<1x8x8xf32> -> vector<4x8x8xf32>
    "tpu.trace_start"() <{level = 10 : i32, message = "hqd,hkd->hqk"}> : () -> ()
    %cst_33 = arith.constant dense<0.000000e+00> : vector<4x8x8xf32>
    %53 = tpu.matmul %34, %43, %cst_33 {dimension_numbers = #tpu.dot_dimension_numbers<[2], [2], [1], [1], [0, 0, 0, 1, 1, 1], [0], [0]>} : vector<4x8x8xf32>, vector<4x8x8xf32>, vector<4x8x8xf32> -> vector<4x8x8xf32>
    "tpu.trace_stop"() : () -> ()
    %54 = vector.shape_cast %3 : vector<1x8xf32> to vector<1x1x8xf32>
    %55 = vector.broadcast %54 : vector<1x1x8xf32> to vector<4x8x8xf32>
    %56 = arith.addf %53, %55 : vector<4x8x8xf32>
    %cst_34 = arith.constant dense<0xFF800000> : vector<4x8xf32>
    %57 = vector.multi_reduction <maximumf>, %56, %cst_34 [2] : vector<4x8x8xf32> to vector<4x8xf32>
    %58 = vector.shape_cast %57 : vector<4x8xf32> to vector<4x8x1xf32>
    %59 = vector.broadcast %58 : vector<4x8x1xf32> to vector<4x8x8xf32>
    %60 = arith.subf %56, %59 : vector<4x8x8xf32>
    %61 = math.exp %60 : vector<4x8x8xf32>
    %cst_35 = arith.constant dense<0.000000e+00> : vector<4x8xf32>
    %62 = vector.multi_reduction <add>, %61, %cst_35 [2] : vector<4x8x8xf32> to vector<4x8xf32>
    %63 = vector.shape_cast %62 : vector<4x8xf32> to vector<4x8x1xf32>
    %64 = tpu.reciprocal %63 {approx = true} : vector<4x8x1xf32> -> vector<4x8x1xf32>
    %65 = vector.broadcast %64 : vector<4x8x1xf32> to vector<4x8x8xf32>
    %66 = arith.mulf %61, %65 : vector<4x8x8xf32>
    "tpu.trace_start"() <{level = 10 : i32, message = "hqk,hkd->hqd"}> : () -> ()
    %cst_36 = arith.constant dense<0.000000e+00> : vector<4x8x8xf32>
    %67 = tpu.matmul %66, %52, %cst_36 {dimension_numbers = #tpu.dot_dimension_numbers<[2], [1], [1], [2], [0, 0, 0, 1, 1, 2], [0], [0]>} : vector<4x8x8xf32>, vector<4x8x8xf32>, vector<4x8x8xf32> -> vector<4x8x8xf32>
    "tpu.trace_stop"() : () -> ()
    %68 = vector.extract_strided_slice %67 {offsets = [0, 0, 0], sizes = [1, 8, 8], strides = [1, 1, 1]} : vector<4x8x8xf32> to vector<1x8x8xf32>
    %69 = vector.shape_cast %68 : vector<1x8x8xf32> to vector<8x8xf32>
    %70 = vector.extract_strided_slice %67 {offsets = [1, 0, 0], sizes = [1, 8, 8], strides = [1, 1, 1]} : vector<4x8x8xf32> to vector<1x8x8xf32>
    %71 = vector.shape_cast %70 : vector<1x8x8xf32> to vector<8x8xf32>
    %72 = vector.extract_strided_slice %67 {offsets = [2, 0, 0], sizes = [1, 8, 8], strides = [1, 1, 1]} : vector<4x8x8xf32> to vector<1x8x8xf32>
    %73 = vector.shape_cast %72 : vector<1x8x8xf32> to vector<8x8xf32>
    %74 = vector.extract_strided_slice %67 {offsets = [3, 0, 0], sizes = [1, 8, 8], strides = [1, 1, 1]} : vector<4x8x8xf32> to vector<1x8x8xf32>
    %75 = vector.shape_cast %74 : vector<1x8x8xf32> to vector<8x8xf32>
    %76 = tpu.concatenate %69, %71, %73, %75 in 1 : vector<8x8xf32>, vector<8x8xf32>, vector<8x8xf32>, vector<8x8xf32> -> vector<8x32xf32>
    %cst_37 = arith.constant dense<0.000000e+00> : vector<8x32xf32>
    %77 = tpu.matmul %76, %8, %cst_37 {dimension_numbers = #tpu.dot_dimension_numbers<[1], [0], [0], [1], [0, 0, 1, 1], [], []>} : vector<8x32xf32>, vector<32x32xf32>, vector<8x32xf32> -> vector<8x32xf32>
    %78 = vector.broadcast %9 : vector<1x32xf32> to vector<8x32xf32>
    %79 = arith.addf %77, %78 : vector<8x32xf32>
    %80 = arith.addf %1, %79 : vector<8x32xf32>
    %cst_38 = arith.constant dense<0.000000e+00> : vector<8xf32>
    %81 = vector.multi_reduction <add>, %80, %cst_38 [1] : vector<8x32xf32> to vector<8xf32>
    %82 = vector.shape_cast %81 : vector<8xf32> to vector<8x1xf32>
    %cst_39 = arith.constant 3.200000e+01 : f32
    %83 = vector.broadcast %cst_39 : f32 to vector<8x1xf32>
    %84 = arith.divf %82, %83 : vector<8x1xf32>
    %85 = vector.broadcast %84 : vector<8x1xf32> to vector<8x32xf32>
    %86 = arith.subf %80, %85 : vector<8x32xf32>
    %87 = arith.mulf %86, %86 : vector<8x32xf32>
    %cst_40 = arith.constant dense<0.000000e+00> : vector<8xf32>
    %88 = vector.multi_reduction <add>, %87, %cst_40 [1] : vector<8x32xf32> to vector<8xf32>
    %89 = vector.shape_cast %88 : vector<8xf32> to vector<8x1xf32>
    %cst_41 = arith.constant 3.200000e+01 : f32
    %90 = vector.broadcast %cst_41 : f32 to vector<8x1xf32>
    %91 = arith.divf %89, %90 : vector<8x1xf32>
    %cst_42 = arith.constant 9.99999974E-6 : f32
    %92 = vector.broadcast %cst_42 : f32 to vector<8x1xf32>
    %93 = arith.addf %91, %92 : vector<8x1xf32>
    %94 = math.rsqrt %93 : vector<8x1xf32>
    %95 = vector.broadcast %94 : vector<8x1xf32> to vector<8x32xf32>
    %96 = vector.broadcast %14 : vector<1x32xf32> to vector<8x32xf32>
    %97 = arith.mulf %95, %96 : vector<8x32xf32>
    %98 = arith.mulf %86, %97 : vector<8x32xf32>
    %99 = vector.broadcast %15 : vector<1x32xf32> to vector<8x32xf32>
    %100 = arith.addf %98, %99 : vector<8x32xf32>
    %cst_43 = arith.constant dense<0.000000e+00> : vector<8x64xf32>
    %101 = tpu.matmul %100, %10, %cst_43 {dimension_numbers = #tpu.dot_dimension_numbers<[1], [0], [0], [1], [0, 0, 1, 1], [], []>} : vector<8x32xf32>, vector<32x64xf32>, vector<8x64xf32> -> vector<8x64xf32>
    %102 = vector.broadcast %11 : vector<1x64xf32> to vector<8x64xf32>
    %103 = arith.addf %101, %102 : vector<8x64xf32>
    %cst_44 = arith.constant 0.000000e+00 : f32
    %104 = vector.broadcast %cst_44 : f32 to vector<8x64xf32>
    %105 = arith.maximumf %103, %104 : vector<8x64xf32>
    %cst_45 = arith.constant dense<0.000000e+00> : vector<8x32xf32>
    %106 = tpu.matmul %105, %12, %cst_45 {dimension_numbers = #tpu.dot_dimension_numbers<[1], [0], [0], [1], [0, 0, 1, 1], [], []>} : vector<8x64xf32>, vector<64x32xf32>, vector<8x32xf32> -> vector<8x32xf32>
    %107 = vector.broadcast %13 : vector<1x32xf32> to vector<8x32xf32>
    %108 = arith.addf %106, %107 : vector<8x32xf32>
    %109 = arith.addf %100, %108 : vector<8x32xf32>
    %cst_46 = arith.constant dense<0.000000e+00> : vector<8xf32>
    %110 = vector.multi_reduction <add>, %109, %cst_46 [1] : vector<8x32xf32> to vector<8xf32>
    %111 = vector.shape_cast %110 : vector<8xf32> to vector<8x1xf32>
    %cst_47 = arith.constant 3.200000e+01 : f32
    %112 = vector.broadcast %cst_47 : f32 to vector<8x1xf32>
    %113 = arith.divf %111, %112 : vector<8x1xf32>
    %114 = vector.broadcast %113 : vector<8x1xf32> to vector<8x32xf32>
    %115 = arith.subf %109, %114 : vector<8x32xf32>
    %116 = arith.mulf %115, %115 : vector<8x32xf32>
    %cst_48 = arith.constant dense<0.000000e+00> : vector<8xf32>
    %117 = vector.multi_reduction <add>, %116, %cst_48 [1] : vector<8x32xf32> to vector<8xf32>
    %118 = vector.shape_cast %117 : vector<8xf32> to vector<8x1xf32>
    %cst_49 = arith.constant 3.200000e+01 : f32
    %119 = vector.broadcast %cst_49 : f32 to vector<8x1xf32>
    %120 = arith.divf %118, %119 : vector<8x1xf32>
    %cst_50 = arith.constant 9.99999974E-6 : f32
    %121 = vector.broadcast %cst_50 : f32 to vector<8x1xf32>
    %122 = arith.addf %120, %121 : vector<8x1xf32>
    %123 = math.rsqrt %122 : vector<8x1xf32>
    %124 = vector.broadcast %123 : vector<8x1xf32> to vector<8x32xf32>
    %125 = vector.broadcast %16 : vector<1x32xf32> to vector<8x32xf32>
    %126 = arith.mulf %124, %125 : vector<8x32xf32>
    %127 = arith.mulf %115, %126 : vector<8x32xf32>
    %128 = vector.broadcast %17 : vector<1x32xf32> to vector<8x32xf32>
    %129 = arith.addf %127, %128 : vector<8x32xf32>
    %c0_51 = arith.constant 0 : index
    %c0_52 = arith.constant 0 : index
    %130 = vector.load %arg16[%c0_51, %c0_52] : memref<32x96xf32, #tpu.memory_space<vmem>>, vector<32x96xf32>
    %c0_53 = arith.constant 0 : index
    %c0_54 = arith.constant 0 : index
    %131 = vector.load %arg17[%c0_53, %c0_54] : memref<1x96xf32, #tpu.memory_space<vmem>>, vector<1x96xf32>
    %c0_55 = arith.constant 0 : index
    %c0_56 = arith.constant 0 : index
    %132 = vector.load %arg18[%c0_55, %c0_56] : memref<32x32xf32, #tpu.memory_space<vmem>>, vector<32x32xf32>
    %c0_57 = arith.constant 0 : index
    %c0_58 = arith.constant 0 : index
    %133 = vector.load %arg19[%c0_57, %c0_58] : memref<1x32xf32, #tpu.memory_space<vmem>>, vector<1x32xf32>
    %c0_59 = arith.constant 0 : index
    %c0_60 = arith.constant 0 : index
    %134 = vector.load %arg20[%c0_59, %c0_60] : memref<32x32xf32, #tpu.memory_space<vmem>>, vector<32x32xf32>
    %c0_61 = arith.constant 0 : index
    %c0_62 = arith.constant 0 : index
    %135 = vector.load %arg21[%c0_61, %c0_62] : memref<1x32xf32, #tpu.memory_space<vmem>>, vector<1x32xf32>
    %c0_63 = arith.constant 0 : index
    %c0_64 = arith.constant 0 : index
    %136 = vector.load %arg22[%c0_63, %c0_64] : memref<32x64xf32, #tpu.memory_space<vmem>>, vector<32x64xf32>
    %c0_65 = arith.constant 0 : index
    %c0_66 = arith.constant 0 : index
    %137 = vector.load %arg23[%c0_65, %c0_66] : memref<1x64xf32, #tpu.memory_space<vmem>>, vector<1x64xf32>
    %c0_67 = arith.constant 0 : index
    %c0_68 = arith.constant 0 : index
    %138 = vector.load %arg24[%c0_67, %c0_68] : memref<32x32xf32, #tpu.memory_space<vmem>>, vector<32x32xf32>
    %c0_69 = arith.constant 0 : index
    %c0_70 = arith.constant 0 : index
    %139 = vector.load %arg25[%c0_69, %c0_70] : memref<1x32xf32, #tpu.memory_space<vmem>>, vector<1x32xf32>
    %c0_71 = arith.constant 0 : index
    %c0_72 = arith.constant 0 : index
    %140 = vector.load %arg26[%c0_71, %c0_72] : memref<32x64xf32, #tpu.memory_space<vmem>>, vector<32x64xf32>
    %c0_73 = arith.constant 0 : index
    %c0_74 = arith.constant 0 : index
    %141 = vector.load %arg27[%c0_73, %c0_74] : memref<1x64xf32, #tpu.memory_space<vmem>>, vector<1x64xf32>
    %c0_75 = arith.constant 0 : index
    %c0_76 = arith.constant 0 : index
    %142 = vector.load %arg28[%c0_75, %c0_76] : memref<64x32xf32, #tpu.memory_space<vmem>>, vector<64x32xf32>
    %c0_77 = arith.constant 0 : index
    %c0_78 = arith.constant 0 : index
    %143 = vector.load %arg29[%c0_77, %c0_78] : memref<1x32xf32, #tpu.memory_space<vmem>>, vector<1x32xf32>
    %c0_79 = arith.constant 0 : index
    %c0_80 = arith.constant 0 : index
    %144 = vector.load %arg30[%c0_79, %c0_80] : memref<1x32xf32, #tpu.memory_space<vmem>>, vector<1x32xf32>
    %c0_81 = arith.constant 0 : index
    %c0_82 = arith.constant 0 : index
    %145 = vector.load %arg31[%c0_81, %c0_82] : memref<1x32xf32, #tpu.memory_space<vmem>>, vector<1x32xf32>
    %c0_83 = arith.constant 0 : index
    %c0_84 = arith.constant 0 : index
    %146 = vector.load %arg32[%c0_83, %c0_84] : memref<1x32xf32, #tpu.memory_space<vmem>>, vector<1x32xf32>
    %c0_85 = arith.constant 0 : index
    %c0_86 = arith.constant 0 : index
    %147 = vector.load %arg33[%c0_85, %c0_86] : memref<1x32xf32, #tpu.memory_space<vmem>>, vector<1x32xf32>
    %c0_87 = arith.constant 0 : index
    %c0_88 = arith.constant 0 : index
    %148 = vector.load %arg34[%c0_87, %c0_88] : memref<1x32xf32, #tpu.memory_space<vmem>>, vector<1x32xf32>
    %c0_89 = arith.constant 0 : index
    %c0_90 = arith.constant 0 : index
    %149 = vector.load %arg35[%c0_89, %c0_90] : memref<1x32xf32, #tpu.memory_space<vmem>>, vector<1x32xf32>
    %cst_91 = arith.constant dense<0.000000e+00> : vector<8x96xf32>
    %150 = tpu.matmul %129, %130, %cst_91 {dimension_numbers = #tpu.dot_dimension_numbers<[1], [0], [0], [1], [0, 0, 1, 1], [], []>} : vector<8x32xf32>, vector<32x96xf32>, vector<8x96xf32> -> vector<8x96xf32>
    %151 = vector.broadcast %131 : vector<1x96xf32> to vector<8x96xf32>
    %152 = arith.addf %150, %151 : vector<8x96xf32>
    %153 = vector.extract_strided_slice %152 {offsets = [0, 0], sizes = [8, 32], strides = [1, 1]} : vector<8x96xf32> to vector<8x32xf32>
    %154 = vector.extract_strided_slice %152 {offsets = [0, 32], sizes = [8, 32], strides = [1, 1]} : vector<8x96xf32> to vector<8x32xf32>
    %155 = vector.extract_strided_slice %152 {offsets = [0, 64], sizes = [8, 32], strides = [1, 1]} : vector<8x96xf32> to vector<8x32xf32>
    %cst_92 = arith.constant 0.353553385 : f32
    %156 = vector.broadcast %cst_92 : f32 to vector<8x32xf32>
    %157 = arith.mulf %153, %156 : vector<8x32xf32>
    %158 = vector.extract_strided_slice %157 {offsets = [0, 0], sizes = [8, 8], strides = [1, 1]} : vector<8x32xf32> to vector<8x8xf32>
    %159 = vector.extract_strided_slice %157 {offsets = [0, 8], sizes = [8, 8], strides = [1, 1]} : vector<8x32xf32> to vector<8x8xf32>
    %160 = vector.extract_strided_slice %157 {offsets = [0, 16], sizes = [8, 8], strides = [1, 1]} : vector<8x32xf32> to vector<8x8xf32>
    %161 = vector.extract_strided_slice %157 {offsets = [0, 24], sizes = [8, 8], strides = [1, 1]} : vector<8x32xf32> to vector<8x8xf32>
    %162 = vector.shape_cast %158 : vector<8x8xf32> to vector<1x8x8xf32>
    %163 = vector.shape_cast %159 : vector<8x8xf32> to vector<1x8x8xf32>
    %164 = vector.shape_cast %160 : vector<8x8xf32> to vector<1x8x8xf32>
    %165 = vector.shape_cast %161 : vector<8x8xf32> to vector<1x8x8xf32>
    %166 = tpu.concatenate %162, %163, %164, %165 in 0 : vector<1x8x8xf32>, vector<1x8x8xf32>, vector<1x8x8xf32>, vector<1x8x8xf32> -> vector<4x8x8xf32>
    %167 = vector.extract_strided_slice %154 {offsets = [0, 0], sizes = [8, 8], strides = [1, 1]} : vector<8x32xf32> to vector<8x8xf32>
    %168 = vector.extract_strided_slice %154 {offsets = [0, 8], sizes = [8, 8], strides = [1, 1]} : vector<8x32xf32> to vector<8x8xf32>
    %169 = vector.extract_strided_slice %154 {offsets = [0, 16], sizes = [8, 8], strides = [1, 1]} : vector<8x32xf32> to vector<8x8xf32>
    %170 = vector.extract_strided_slice %154 {offsets = [0, 24], sizes = [8, 8], strides = [1, 1]} : vector<8x32xf32> to vector<8x8xf32>
    %171 = vector.shape_cast %167 : vector<8x8xf32> to vector<1x8x8xf32>
    %172 = vector.shape_cast %168 : vector<8x8xf32> to vector<1x8x8xf32>
    %173 = vector.shape_cast %169 : vector<8x8xf32> to vector<1x8x8xf32>
    %174 = vector.shape_cast %170 : vector<8x8xf32> to vector<1x8x8xf32>
    %175 = tpu.concatenate %171, %172, %173, %174 in 0 : vector<1x8x8xf32>, vector<1x8x8xf32>, vector<1x8x8xf32>, vector<1x8x8xf32> -> vector<4x8x8xf32>
    %176 = vector.extract_strided_slice %155 {offsets = [0, 0], sizes = [8, 8], strides = [1, 1]} : vector<8x32xf32> to vector<8x8xf32>
    %177 = vector.extract_strided_slice %155 {offsets = [0, 8], sizes = [8, 8], strides = [1, 1]} : vector<8x32xf32> to vector<8x8xf32>
    %178 = vector.extract_strided_slice %155 {offsets = [0, 16], sizes = [8, 8], strides = [1, 1]} : vector<8x32xf32> to vector<8x8xf32>
    %179 = vector.extract_strided_slice %155 {offsets = [0, 24], sizes = [8, 8], strides = [1, 1]} : vector<8x32xf32> to vector<8x8xf32>
    %180 = vector.shape_cast %176 : vector<8x8xf32> to vector<1x8x8xf32>
    %181 = vector.shape_cast %177 : vector<8x8xf32> to vector<1x8x8xf32>
    %182 = vector.shape_cast %178 : vector<8x8xf32> to vector<1x8x8xf32>
    %183 = vector.shape_cast %179 : vector<8x8xf32> to vector<1x8x8xf32>
    %184 = tpu.concatenate %180, %181, %182, %183 in 0 : vector<1x8x8xf32>, vector<1x8x8xf32>, vector<1x8x8xf32>, vector<1x8x8xf32> -> vector<4x8x8xf32>
    "tpu.trace_start"() <{level = 10 : i32, message = "hqd,hkd->hqk"}> : () -> ()
    %cst_93 = arith.constant dense<0.000000e+00> : vector<4x8x8xf32>
    %185 = tpu.matmul %166, %175, %cst_93 {dimension_numbers = #tpu.dot_dimension_numbers<[2], [2], [1], [1], [0, 0, 0, 1, 1, 1], [0], [0]>} : vector<4x8x8xf32>, vector<4x8x8xf32>, vector<4x8x8xf32> -> vector<4x8x8xf32>
    "tpu.trace_stop"() : () -> ()
    %186 = vector.shape_cast %3 : vector<1x8xf32> to vector<1x1x8xf32>
    %187 = vector.broadcast %186 : vector<1x1x8xf32> to vector<4x8x8xf32>
    %188 = arith.addf %185, %187 : vector<4x8x8xf32>
    %cst_94 = arith.constant dense<0xFF800000> : vector<4x8xf32>
    %189 = vector.multi_reduction <maximumf>, %188, %cst_94 [2] : vector<4x8x8xf32> to vector<4x8xf32>
    %190 = vector.shape_cast %189 : vector<4x8xf32> to vector<4x8x1xf32>
    %191 = vector.broadcast %190 : vector<4x8x1xf32> to vector<4x8x8xf32>
    %192 = arith.subf %188, %191 : vector<4x8x8xf32>
    %193 = math.exp %192 : vector<4x8x8xf32>
    %cst_95 = arith.constant dense<0.000000e+00> : vector<4x8xf32>
    %194 = vector.multi_reduction <add>, %193, %cst_95 [2] : vector<4x8x8xf32> to vector<4x8xf32>
    %195 = vector.shape_cast %194 : vector<4x8xf32> to vector<4x8x1xf32>
    %196 = tpu.reciprocal %195 {approx = true} : vector<4x8x1xf32> -> vector<4x8x1xf32>
    %197 = vector.broadcast %196 : vector<4x8x1xf32> to vector<4x8x8xf32>
    %198 = arith.mulf %193, %197 : vector<4x8x8xf32>
    "tpu.trace_start"() <{level = 10 : i32, message = "hqk,hkd->hqd"}> : () -> ()
    %cst_96 = arith.constant dense<0.000000e+00> : vector<4x8x8xf32>
    %199 = tpu.matmul %198, %184, %cst_96 {dimension_numbers = #tpu.dot_dimension_numbers<[2], [1], [1], [2], [0, 0, 0, 1, 1, 2], [0], [0]>} : vector<4x8x8xf32>, vector<4x8x8xf32>, vector<4x8x8xf32> -> vector<4x8x8xf32>
    "tpu.trace_stop"() : () -> ()
    %200 = vector.extract_strided_slice %199 {offsets = [0, 0, 0], sizes = [1, 8, 8], strides = [1, 1, 1]} : vector<4x8x8xf32> to vector<1x8x8xf32>
    %201 = vector.shape_cast %200 : vector<1x8x8xf32> to vector<8x8xf32>
    %202 = vector.extract_strided_slice %199 {offsets = [1, 0, 0], sizes = [1, 8, 8], strides = [1, 1, 1]} : vector<4x8x8xf32> to vector<1x8x8xf32>
    %203 = vector.shape_cast %202 : vector<1x8x8xf32> to vector<8x8xf32>
    %204 = vector.extract_strided_slice %199 {offsets = [2, 0, 0], sizes = [1, 8, 8], strides = [1, 1, 1]} : vector<4x8x8xf32> to vector<1x8x8xf32>
    %205 = vector.shape_cast %204 : vector<1x8x8xf32> to vector<8x8xf32>
    %206 = vector.extract_strided_slice %199 {offsets = [3, 0, 0], sizes = [1, 8, 8], strides = [1, 1, 1]} : vector<4x8x8xf32> to vector<1x8x8xf32>
    %207 = vector.shape_cast %206 : vector<1x8x8xf32> to vector<8x8xf32>
    %208 = tpu.concatenate %201, %203, %205, %207 in 1 : vector<8x8xf32>, vector<8x8xf32>, vector<8x8xf32>, vector<8x8xf32> -> vector<8x32xf32>
    %cst_97 = arith.constant dense<0.000000e+00> : vector<8x32xf32>
    %209 = tpu.matmul %208, %132, %cst_97 {dimension_numbers = #tpu.dot_dimension_numbers<[1], [0], [0], [1], [0, 0, 1, 1], [], []>} : vector<8x32xf32>, vector<32x32xf32>, vector<8x32xf32> -> vector<8x32xf32>
    %210 = vector.broadcast %133 : vector<1x32xf32> to vector<8x32xf32>
    %211 = arith.addf %209, %210 : vector<8x32xf32>
    %212 = arith.addf %129, %211 : vector<8x32xf32>
    %cst_98 = arith.constant dense<0.000000e+00> : vector<8xf32>
    %213 = vector.multi_reduction <add>, %212, %cst_98 [1] : vector<8x32xf32> to vector<8xf32>
    %214 = vector.shape_cast %213 : vector<8xf32> to vector<8x1xf32>
    %cst_99 = arith.constant 3.200000e+01 : f32
    %215 = vector.broadcast %cst_99 : f32 to vector<8x1xf32>
    %216 = arith.divf %214, %215 : vector<8x1xf32>
    %217 = vector.broadcast %216 : vector<8x1xf32> to vector<8x32xf32>
    %218 = arith.subf %212, %217 : vector<8x32xf32>
    %219 = arith.mulf %218, %218 : vector<8x32xf32>
    %cst_100 = arith.constant dense<0.000000e+00> : vector<8xf32>
    %220 = vector.multi_reduction <add>, %219, %cst_100 [1] : vector<8x32xf32> to vector<8xf32>
    %221 = vector.shape_cast %220 : vector<8xf32> to vector<8x1xf32>
    %cst_101 = arith.constant 3.200000e+01 : f32
    %222 = vector.broadcast %cst_101 : f32 to vector<8x1xf32>
    %223 = arith.divf %221, %222 : vector<8x1xf32>
    %cst_102 = arith.constant 9.99999974E-6 : f32
    %224 = vector.broadcast %cst_102 : f32 to vector<8x1xf32>
    %225 = arith.addf %223, %224 : vector<8x1xf32>
    %226 = math.rsqrt %225 : vector<8x1xf32>
    %227 = vector.broadcast %226 : vector<8x1xf32> to vector<8x32xf32>
    %228 = vector.broadcast %144 : vector<1x32xf32> to vector<8x32xf32>
    %229 = arith.mulf %227, %228 : vector<8x32xf32>
    %230 = arith.mulf %218, %229 : vector<8x32xf32>
    %231 = vector.broadcast %145 : vector<1x32xf32> to vector<8x32xf32>
    %232 = arith.addf %230, %231 : vector<8x32xf32>
    %cst_103 = arith.constant dense<0.000000e+00> : vector<8x32xf32>
    %233 = tpu.matmul %232, %134, %cst_103 {dimension_numbers = #tpu.dot_dimension_numbers<[1], [0], [0], [1], [0, 0, 1, 1], [], []>} : vector<8x32xf32>, vector<32x32xf32>, vector<8x32xf32> -> vector<8x32xf32>
    %234 = vector.broadcast %135 : vector<1x32xf32> to vector<8x32xf32>
    %235 = arith.addf %233, %234 : vector<8x32xf32>
    %cst_104 = arith.constant dense<0.000000e+00> : vector<8x64xf32>
    %236 = tpu.matmul %129, %136, %cst_104 {dimension_numbers = #tpu.dot_dimension_numbers<[1], [0], [0], [1], [0, 0, 1, 1], [], []>} : vector<8x32xf32>, vector<32x64xf32>, vector<8x64xf32> -> vector<8x64xf32>
    %237 = vector.broadcast %137 : vector<1x64xf32> to vector<8x64xf32>
    %238 = arith.addf %236, %237 : vector<8x64xf32>
    %239 = vector.extract_strided_slice %238 {offsets = [0, 0], sizes = [8, 32], strides = [1, 1]} : vector<8x64xf32> to vector<8x32xf32>
    %240 = vector.extract_strided_slice %238 {offsets = [0, 32], sizes = [8, 32], strides = [1, 1]} : vector<8x64xf32> to vector<8x32xf32>
    %cst_105 = arith.constant 0.353553385 : f32
    %241 = vector.broadcast %cst_105 : f32 to vector<8x32xf32>
    %242 = arith.mulf %235, %241 : vector<8x32xf32>
    %243 = vector.extract_strided_slice %242 {offsets = [0, 0], sizes = [8, 8], strides = [1, 1]} : vector<8x32xf32> to vector<8x8xf32>
    %244 = vector.extract_strided_slice %242 {offsets = [0, 8], sizes = [8, 8], strides = [1, 1]} : vector<8x32xf32> to vector<8x8xf32>
    %245 = vector.extract_strided_slice %242 {offsets = [0, 16], sizes = [8, 8], strides = [1, 1]} : vector<8x32xf32> to vector<8x8xf32>
    %246 = vector.extract_strided_slice %242 {offsets = [0, 24], sizes = [8, 8], strides = [1, 1]} : vector<8x32xf32> to vector<8x8xf32>
    %247 = vector.shape_cast %243 : vector<8x8xf32> to vector<1x8x8xf32>
    %248 = vector.shape_cast %244 : vector<8x8xf32> to vector<1x8x8xf32>
    %249 = vector.shape_cast %245 : vector<8x8xf32> to vector<1x8x8xf32>
    %250 = vector.shape_cast %246 : vector<8x8xf32> to vector<1x8x8xf32>
    %251 = tpu.concatenate %247, %248, %249, %250 in 0 : vector<1x8x8xf32>, vector<1x8x8xf32>, vector<1x8x8xf32>, vector<1x8x8xf32> -> vector<4x8x8xf32>
    %252 = vector.extract_strided_slice %239 {offsets = [0, 0], sizes = [8, 8], strides = [1, 1]} : vector<8x32xf32> to vector<8x8xf32>
    %253 = vector.extract_strided_slice %239 {offsets = [0, 8], sizes = [8, 8], strides = [1, 1]} : vector<8x32xf32> to vector<8x8xf32>
    %254 = vector.extract_strided_slice %239 {offsets = [0, 16], sizes = [8, 8], strides = [1, 1]} : vector<8x32xf32> to vector<8x8xf32>
    %255 = vector.extract_strided_slice %239 {offsets = [0, 24], sizes = [8, 8], strides = [1, 1]} : vector<8x32xf32> to vector<8x8xf32>
    %256 = vector.shape_cast %252 : vector<8x8xf32> to vector<1x8x8xf32>
    %257 = vector.shape_cast %253 : vector<8x8xf32> to vector<1x8x8xf32>
    %258 = vector.shape_cast %254 : vector<8x8xf32> to vector<1x8x8xf32>
    %259 = vector.shape_cast %255 : vector<8x8xf32> to vector<1x8x8xf32>
    %260 = tpu.concatenate %256, %257, %258, %259 in 0 : vector<1x8x8xf32>, vector<1x8x8xf32>, vector<1x8x8xf32>, vector<1x8x8xf32> -> vector<4x8x8xf32>
    %261 = vector.extract_strided_slice %240 {offsets = [0, 0], sizes = [8, 8], strides = [1, 1]} : vector<8x32xf32> to vector<8x8xf32>
    %262 = vector.extract_strided_slice %240 {offsets = [0, 8], sizes = [8, 8], strides = [1, 1]} : vector<8x32xf32> to vector<8x8xf32>
    %263 = vector.extract_strided_slice %240 {offsets = [0, 16], sizes = [8, 8], strides = [1, 1]} : vector<8x32xf32> to vector<8x8xf32>
    %264 = vector.extract_strided_slice %240 {offsets = [0, 24], sizes = [8, 8], strides = [1, 1]} : vector<8x32xf32> to vector<8x8xf32>
    %265 = vector.shape_cast %261 : vector<8x8xf32> to vector<1x8x8xf32>
    %266 = vector.shape_cast %262 : vector<8x8xf32> to vector<1x8x8xf32>
    %267 = vector.shape_cast %263 : vector<8x8xf32> to vector<1x8x8xf32>
    %268 = vector.shape_cast %264 : vector<8x8xf32> to vector<1x8x8xf32>
    %269 = tpu.concatenate %265, %266, %267, %268 in 0 : vector<1x8x8xf32>, vector<1x8x8xf32>, vector<1x8x8xf32>, vector<1x8x8xf32> -> vector<4x8x8xf32>
    "tpu.trace_start"() <{level = 10 : i32, message = "hqd,hkd->hqk"}> : () -> ()
    %cst_106 = arith.constant dense<0.000000e+00> : vector<4x8x8xf32>
    %270 = tpu.matmul %251, %260, %cst_106 {dimension_numbers = #tpu.dot_dimension_numbers<[2], [2], [1], [1], [0, 0, 0, 1, 1, 1], [0], [0]>} : vector<4x8x8xf32>, vector<4x8x8xf32>, vector<4x8x8xf32> -> vector<4x8x8xf32>
    "tpu.trace_stop"() : () -> ()
    %cst_107 = arith.constant dense<0xFF800000> : vector<4x8xf32>
    %271 = vector.multi_reduction <maximumf>, %270, %cst_107 [2] : vector<4x8x8xf32> to vector<4x8xf32>
    %272 = vector.shape_cast %271 : vector<4x8xf32> to vector<4x8x1xf32>
    %273 = vector.broadcast %272 : vector<4x8x1xf32> to vector<4x8x8xf32>
    %274 = arith.subf %270, %273 : vector<4x8x8xf32>
    %275 = math.exp %274 : vector<4x8x8xf32>
    %cst_108 = arith.constant dense<0.000000e+00> : vector<4x8xf32>
    %276 = vector.multi_reduction <add>, %275, %cst_108 [2] : vector<4x8x8xf32> to vector<4x8xf32>
    %277 = vector.shape_cast %276 : vector<4x8xf32> to vector<4x8x1xf32>
    %278 = tpu.reciprocal %277 {approx = true} : vector<4x8x1xf32> -> vector<4x8x1xf32>
    %279 = vector.broadcast %278 : vector<4x8x1xf32> to vector<4x8x8xf32>
    %280 = arith.mulf %275, %279 : vector<4x8x8xf32>
    "tpu.trace_start"() <{level = 10 : i32, message = "hqk,hkd->hqd"}> : () -> ()
    %cst_109 = arith.constant dense<0.000000e+00> : vector<4x8x8xf32>
    %281 = tpu.matmul %280, %269, %cst_109 {dimension_numbers = #tpu.dot_dimension_numbers<[2], [1], [1], [2], [0, 0, 0, 1, 1, 2], [0], [0]>} : vector<4x8x8xf32>, vector<4x8x8xf32>, vector<4x8x8xf32> -> vector<4x8x8xf32>
    "tpu.trace_stop"() : () -> ()
    %282 = vector.extract_strided_slice %281 {offsets = [0, 0, 0], sizes = [1, 8, 8], strides = [1, 1, 1]} : vector<4x8x8xf32> to vector<1x8x8xf32>
    %283 = vector.shape_cast %282 : vector<1x8x8xf32> to vector<8x8xf32>
    %284 = vector.extract_strided_slice %281 {offsets = [1, 0, 0], sizes = [1, 8, 8], strides = [1, 1, 1]} : vector<4x8x8xf32> to vector<1x8x8xf32>
    %285 = vector.shape_cast %284 : vector<1x8x8xf32> to vector<8x8xf32>
    %286 = vector.extract_strided_slice %281 {offsets = [2, 0, 0], sizes = [1, 8, 8], strides = [1, 1, 1]} : vector<4x8x8xf32> to vector<1x8x8xf32>
    %287 = vector.shape_cast %286 : vector<1x8x8xf32> to vector<8x8xf32>
    %288 = vector.extract_strided_slice %281 {offsets = [3, 0, 0], sizes = [1, 8, 8], strides = [1, 1, 1]} : vector<4x8x8xf32> to vector<1x8x8xf32>
    %289 = vector.shape_cast %288 : vector<1x8x8xf32> to vector<8x8xf32>
    %290 = tpu.concatenate %283, %285, %287, %289 in 1 : vector<8x8xf32>, vector<8x8xf32>, vector<8x8xf32>, vector<8x8xf32> -> vector<8x32xf32>
    %cst_110 = arith.constant dense<0.000000e+00> : vector<8x32xf32>
    %291 = tpu.matmul %290, %138, %cst_110 {dimension_numbers = #tpu.dot_dimension_numbers<[1], [0], [0], [1], [0, 0, 1, 1], [], []>} : vector<8x32xf32>, vector<32x32xf32>, vector<8x32xf32> -> vector<8x32xf32>
    %292 = vector.broadcast %139 : vector<1x32xf32> to vector<8x32xf32>
    %293 = arith.addf %291, %292 : vector<8x32xf32>
    %294 = arith.addf %232, %293 : vector<8x32xf32>
    %cst_111 = arith.constant dense<0.000000e+00> : vector<8xf32>
    %295 = vector.multi_reduction <add>, %294, %cst_111 [1] : vector<8x32xf32> to vector<8xf32>
    %296 = vector.shape_cast %295 : vector<8xf32> to vector<8x1xf32>
    %cst_112 = arith.constant 3.200000e+01 : f32
    %297 = vector.broadcast %cst_112 : f32 to vector<8x1xf32>
    %298 = arith.divf %296, %297 : vector<8x1xf32>
    %299 = vector.broadcast %298 : vector<8x1xf32> to vector<8x32xf32>
    %300 = arith.subf %294, %299 : vector<8x32xf32>
    %301 = arith.mulf %300, %300 : vector<8x32xf32>
    %cst_113 = arith.constant dense<0.000000e+00> : vector<8xf32>
    %302 = vector.multi_reduction <add>, %301, %cst_113 [1] : vector<8x32xf32> to vector<8xf32>
    %303 = vector.shape_cast %302 : vector<8xf32> to vector<8x1xf32>
    %cst_114 = arith.constant 3.200000e+01 : f32
    %304 = vector.broadcast %cst_114 : f32 to vector<8x1xf32>
    %305 = arith.divf %303, %304 : vector<8x1xf32>
    %cst_115 = arith.constant 9.99999974E-6 : f32
    %306 = vector.broadcast %cst_115 : f32 to vector<8x1xf32>
    %307 = arith.addf %305, %306 : vector<8x1xf32>
    %308 = math.rsqrt %307 : vector<8x1xf32>
    %309 = vector.broadcast %308 : vector<8x1xf32> to vector<8x32xf32>
    %310 = vector.broadcast %146 : vector<1x32xf32> to vector<8x32xf32>
    %311 = arith.mulf %309, %310 : vector<8x32xf32>
    %312 = arith.mulf %300, %311 : vector<8x32xf32>
    %313 = vector.broadcast %147 : vector<1x32xf32> to vector<8x32xf32>
    %314 = arith.addf %312, %313 : vector<8x32xf32>
    %cst_116 = arith.constant dense<0.000000e+00> : vector<8x64xf32>
    %315 = tpu.matmul %314, %140, %cst_116 {dimension_numbers = #tpu.dot_dimension_numbers<[1], [0], [0], [1], [0, 0, 1, 1], [], []>} : vector<8x32xf32>, vector<32x64xf32>, vector<8x64xf32> -> vector<8x64xf32>
    %316 = vector.broadcast %141 : vector<1x64xf32> to vector<8x64xf32>
    %317 = arith.addf %315, %316 : vector<8x64xf32>
    %cst_117 = arith.constant 0.000000e+00 : f32
    %318 = vector.broadcast %cst_117 : f32 to vector<8x64xf32>
    %319 = arith.maximumf %317, %318 : vector<8x64xf32>
    %cst_118 = arith.constant dense<0.000000e+00> : vector<8x32xf32>
    %320 = tpu.matmul %319, %142, %cst_118 {dimension_numbers = #tpu.dot_dimension_numbers<[1], [0], [0], [1], [0, 0, 1, 1], [], []>} : vector<8x64xf32>, vector<64x32xf32>, vector<8x32xf32> -> vector<8x32xf32>
    %321 = vector.broadcast %143 : vector<1x32xf32> to vector<8x32xf32>
    %322 = arith.addf %320, %321 : vector<8x32xf32>
    %323 = arith.addf %314, %322 : vector<8x32xf32>
    %cst_119 = arith.constant dense<0.000000e+00> : vector<8xf32>
    %324 = vector.multi_reduction <add>, %323, %cst_119 [1] : vector<8x32xf32> to vector<8xf32>
    %325 = vector.shape_cast %324 : vector<8xf32> to vector<8x1xf32>
    %cst_120 = arith.constant 3.200000e+01 : f32
    %326 = vector.broadcast %cst_120 : f32 to vector<8x1xf32>
    %327 = arith.divf %325, %326 : vector<8x1xf32>
    %328 = vector.broadcast %327 : vector<8x1xf32> to vector<8x32xf32>
    %329 = arith.subf %323, %328 : vector<8x32xf32>
    %330 = arith.mulf %329, %329 : vector<8x32xf32>
    %cst_121 = arith.constant dense<0.000000e+00> : vector<8xf32>
    %331 = vector.multi_reduction <add>, %330, %cst_121 [1] : vector<8x32xf32> to vector<8xf32>
    %332 = vector.shape_cast %331 : vector<8xf32> to vector<8x1xf32>
    %cst_122 = arith.constant 3.200000e+01 : f32
    %333 = vector.broadcast %cst_122 : f32 to vector<8x1xf32>
    %334 = arith.divf %332, %333 : vector<8x1xf32>
    %cst_123 = arith.constant 9.99999974E-6 : f32
    %335 = vector.broadcast %cst_123 : f32 to vector<8x1xf32>
    %336 = arith.addf %334, %335 : vector<8x1xf32>
    %337 = math.rsqrt %336 : vector<8x1xf32>
    %338 = vector.broadcast %337 : vector<8x1xf32> to vector<8x32xf32>
    %339 = vector.broadcast %148 : vector<1x32xf32> to vector<8x32xf32>
    %340 = arith.mulf %338, %339 : vector<8x32xf32>
    %341 = arith.mulf %329, %340 : vector<8x32xf32>
    %342 = vector.broadcast %149 : vector<1x32xf32> to vector<8x32xf32>
    %343 = arith.addf %341, %342 : vector<8x32xf32>
    %c0_124 = arith.constant 0 : index
    %c0_125 = arith.constant 0 : index
    %344 = vector.load %arg36[%c0_124, %c0_125] : memref<32x8xf32, #tpu.memory_space<vmem>>, vector<32x8xf32>
    %c0_126 = arith.constant 0 : index
    %c0_127 = arith.constant 0 : index
    %345 = vector.load %arg37[%c0_126, %c0_127] : memref<1x8xf32, #tpu.memory_space<vmem>>, vector<1x8xf32>
    %c0_128 = arith.constant 0 : index
    %c0_129 = arith.constant 0 : index
    %346 = vector.load %arg38[%c0_128, %c0_129] : memref<8x5xf32, #tpu.memory_space<vmem>>, vector<8x5xf32>
    %c0_130 = arith.constant 0 : index
    %c0_131 = arith.constant 0 : index
    %347 = vector.load %arg39[%c0_130, %c0_131] : memref<1x5xf32, #tpu.memory_space<vmem>>, vector<1x5xf32>
    %cst_132 = arith.constant dense<0.000000e+00> : vector<8x8xf32>
    %348 = tpu.matmul %343, %344, %cst_132 {dimension_numbers = #tpu.dot_dimension_numbers<[1], [0], [0], [1], [0, 0, 1, 1], [], []>} : vector<8x32xf32>, vector<32x8xf32>, vector<8x8xf32> -> vector<8x8xf32>
    %349 = vector.broadcast %345 : vector<1x8xf32> to vector<8x8xf32>
    %350 = arith.addf %348, %349 : vector<8x8xf32>
    %351 = vector.broadcast %5 : vector<8x1xf32> to vector<8x8xf32>
    %352 = arith.mulf %350, %351 : vector<8x8xf32>
    %cst_133 = arith.constant dense<0.000000e+00> : vector<8xf32>
    %353 = vector.multi_reduction <add>, %352, %cst_133 [0] : vector<8x8xf32> to vector<8xf32>
    %354 = vector.shape_cast %353 : vector<8xf32> to vector<1x8xf32>
    %355 = vector.shape_cast %5 : vector<8x1xf32> to vector<1x8x1xf32>
    %cst_134 = arith.constant dense<0.000000e+00> : vector<1xf32>
    %356 = vector.multi_reduction <add>, %355, %cst_134 [1, 2] : vector<1x8x1xf32> to vector<1xf32>
    %357 = vector.shape_cast %356 : vector<1xf32> to vector<1x1x1xf32>
    %358 = vector.extract %357[0, 0, 0] : f32 from vector<1x1x1xf32>
    %359 = vector.broadcast %358 : f32 to vector<1x1xf32>
    %cst_135 = arith.constant 1.000000e+00 : f32
    %360 = vector.broadcast %cst_135 : f32 to vector<1x1xf32>
    %361 = arith.maximumf %359, %360 : vector<1x1xf32>
    %362 = tpu.reciprocal %361 {approx = true} : vector<1x1xf32> -> vector<1x1xf32>
    %363 = vector.broadcast %362 : vector<1x1xf32> to vector<1x8xf32>
    %364 = arith.mulf %354, %363 : vector<1x8xf32>
    %cst_136 = arith.constant dense<0.000000e+00> : vector<1x5xf32>
    %365 = tpu.matmul %364, %346, %cst_136 {dimension_numbers = #tpu.dot_dimension_numbers<[1], [0], [0], [1], [0, 0, 1, 1], [], []>} : vector<1x8xf32>, vector<8x5xf32>, vector<1x5xf32> -> vector<1x5xf32>
    %366 = arith.addf %365, %347 : vector<1x5xf32>
    %c0_137 = arith.constant 0 : index
    %c0_138 = arith.constant 0 : index
    %c0_139 = arith.constant 0 : index
    %367 = vector.load %arg40[%c0_137, %c0_138, %c0_139] : memref<1x1x5xf32, #tpu.memory_space<vmem>>, vector<1x1x5xf32>
    %368 = vector.shape_cast %367 : vector<1x1x5xf32> to vector<1x5xf32>
    %369 = vector.shape_cast %366 : vector<1x5xf32> to vector<1x1x5xf32>
    tpu.vector_store %arg40[%c0_137, %c0_138, %c0_139], %369 {strides = array<i32>} : memref<1x1x5xf32, #tpu.memory_space<vmem>>, vector<1x1x5xf32>,
    return
  }
  func.func @transform_0(%arg0: i32) -> (i32, i32, i32) {
    %c0_i32 = arith.constant 0 : i32
    %c0_i32_0 = arith.constant 0 : i32
    %c0_i32_1 = arith.constant 0 : i32
    return %arg0, %c0_i32, %c0_i32_0 : i32, i32, i32
  }
  func.func @transform_1(%arg0: i32) -> (i32, i32, i32) {
    %c0_i32 = arith.constant 0 : i32
    %c0_i32_0 = arith.constant 0 : i32
    %c0_i32_1 = arith.constant 0 : i32
    return %arg0, %c0_i32, %c0_i32_0 : i32, i32, i32
  }
  func.func @transform_2(%arg0: i32) -> (i32, i32, i32) {
    %c0_i32 = arith.constant 0 : i32
    %c0_i32_0 = arith.constant 0 : i32
    %c0_i32_1 = arith.constant 0 : i32
    return %arg0, %c0_i32, %c0_i32_0 : i32, i32, i32
  }
  func.func @transform_3(%arg0: i32) -> (i32, i32) {
    %c0_i32 = arith.constant 0 : i32
    %c0_i32_0 = arith.constant 0 : i32
    %c0_i32_1 = arith.constant 0 : i32
    return %c0_i32, %c0_i32_0 : i32, i32
  }
  func.func @transform_4(%arg0: i32) -> (i32, i32) {
    %c0_i32 = arith.constant 0 : i32
    %c0_i32_0 = arith.constant 0 : i32
    %c0_i32_1 = arith.constant 0 : i32
    return %c0_i32, %c0_i32_0 : i32, i32
  }
  func.func @transform_5(%arg0: i32) -> (i32, i32) {
    %c0_i32 = arith.constant 0 : i32
    %c0_i32_0 = arith.constant 0 : i32
    %c0_i32_1 = arith.constant 0 : i32
    return %c0_i32, %c0_i32_0 : i32, i32
  }
  func.func @transform_6(%arg0: i32) -> (i32, i32) {
    %c0_i32 = arith.constant 0 : i32
    %c0_i32_0 = arith.constant 0 : i32
    %c0_i32_1 = arith.constant 0 : i32
    return %c0_i32, %c0_i32_0 : i32, i32
  }
  func.func @transform_7(%arg0: i32) -> (i32, i32) {
    %c0_i32 = arith.constant 0 : i32
    %c0_i32_0 = arith.constant 0 : i32
    %c0_i32_1 = arith.constant 0 : i32
    return %c0_i32, %c0_i32_0 : i32, i32
  }
  func.func @transform_8(%arg0: i32) -> (i32, i32) {
    %c0_i32 = arith.constant 0 : i32
    %c0_i32_0 = arith.constant 0 : i32
    %c0_i32_1 = arith.constant 0 : i32
    return %c0_i32, %c0_i32_0 : i32, i32
  }
  func.func @transform_9(%arg0: i32) -> (i32, i32) {
    %c0_i32 = arith.constant 0 : i32
    %c0_i32_0 = arith.constant 0 : i32
    %c0_i32_1 = arith.constant 0 : i32
    return %c0_i32, %c0_i32_0 : i32, i32
  }
  func.func @transform_10(%arg0: i32) -> (i32, i32) {
    %c0_i32 = arith.constant 0 : i32
    %c0_i32_0 = arith.constant 0 : i32
    %c0_i32_1 = arith.constant 0 : i32
    return %c0_i32, %c0_i32_0 : i32, i32
  }
  func.func @transform_11(%arg0: i32) -> (i32, i32) {
    %c0_i32 = arith.constant 0 : i32
    %c0_i32_0 = arith.constant 0 : i32
    %c0_i32_1 = arith.constant 0 : i32
    return %c0_i32, %c0_i32_0 : i32, i32
  }
  func.func @transform_12(%arg0: i32) -> (i32, i32) {
    %c0_i32 = arith.constant 0 : i32
    %c0_i32_0 = arith.constant 0 : i32
    %c0_i32_1 = arith.constant 0 : i32
    return %c0_i32, %c0_i32_0 : i32, i32
  }
  func.func @transform_13(%arg0: i32) -> (i32, i32) {
    %c0_i32 = arith.constant 0 : i32
    %c0_i32_0 = arith.constant 0 : i32
    %c0_i32_1 = arith.constant 0 : i32
    return %c0_i32, %c0_i32_0 : i32, i32
  }
  func.func @transform_14(%arg0: i32) -> (i32, i32) {
    %c0_i32 = arith.constant 0 : i32
    %c0_i32_0 = arith.constant 0 : i32
    %c0_i32_1 = arith.constant 0 : i32
    return %c0_i32, %c0_i32_0 : i32, i32
  }
  func.func @transform_15(%arg0: i32) -> (i32, i32) {
    %c0_i32 = arith.constant 0 : i32
    %c0_i32_0 = arith.constant 0 : i32
    %c0_i32_1 = arith.constant 0 : i32
    return %c0_i32, %c0_i32_0 : i32, i32
  }
  func.func @transform_16(%arg0: i32) -> (i32, i32) {
    %c0_i32 = arith.constant 0 : i32
    %c0_i32_0 = arith.constant 0 : i32
    %c0_i32_1 = arith.constant 0 : i32
    return %c0_i32, %c0_i32_0 : i32, i32
  }
  func.func @transform_17(%arg0: i32) -> (i32, i32) {
    %c0_i32 = arith.constant 0 : i32
    %c0_i32_0 = arith.constant 0 : i32
    %c0_i32_1 = arith.constant 0 : i32
    return %c0_i32, %c0_i32_0 : i32, i32
  }
  func.func @transform_18(%arg0: i32) -> (i32, i32) {
    %c0_i32 = arith.constant 0 : i32
    %c0_i32_0 = arith.constant 0 : i32
    %c0_i32_1 = arith.constant 0 : i32
    return %c0_i32, %c0_i32_0 : i32, i32
  }
  func.func @transform_19(%arg0: i32) -> (i32, i32) {
    %c0_i32 = arith.constant 0 : i32
    %c0_i32_0 = arith.constant 0 : i32
    %c0_i32_1 = arith.constant 0 : i32
    return %c0_i32, %c0_i32_0 : i32, i32
  }
  func.func @transform_20(%arg0: i32) -> (i32, i32) {
    %c0_i32 = arith.constant 0 : i32
    %c0_i32_0 = arith.constant 0 : i32
    %c0_i32_1 = arith.constant 0 : i32
    return %c0_i32, %c0_i32_0 : i32, i32
  }
  func.func @transform_21(%arg0: i32) -> (i32, i32) {
    %c0_i32 = arith.constant 0 : i32
    %c0_i32_0 = arith.constant 0 : i32
    %c0_i32_1 = arith.constant 0 : i32
    return %c0_i32, %c0_i32_0 : i32, i32
  }
  func.func @transform_22(%arg0: i32) -> (i32, i32) {
    %c0_i32 = arith.constant 0 : i32
    %c0_i32_0 = arith.constant 0 : i32
    %c0_i32_1 = arith.constant 0 : i32
    return %c0_i32, %c0_i32_0 : i32, i32
  }
  func.func @transform_23(%arg0: i32) -> (i32, i32) {
    %c0_i32 = arith.constant 0 : i32
    %c0_i32_0 = arith.constant 0 : i32
    %c0_i32_1 = arith.constant 0 : i32
    return %c0_i32, %c0_i32_0 : i32, i32
  }
  func.func @transform_24(%arg0: i32) -> (i32, i32) {
    %c0_i32 = arith.constant 0 : i32
    %c0_i32_0 = arith.constant 0 : i32
    %c0_i32_1 = arith.constant 0 : i32
    return %c0_i32, %c0_i32_0 : i32, i32
  }
  func.func @transform_25(%arg0: i32) -> (i32, i32) {
    %c0_i32 = arith.constant 0 : i32
    %c0_i32_0 = arith.constant 0 : i32
    %c0_i32_1 = arith.constant 0 : i32
    return %c0_i32, %c0_i32_0 : i32, i32
  }
  func.func @transform_26(%arg0: i32) -> (i32, i32) {
    %c0_i32 = arith.constant 0 : i32
    %c0_i32_0 = arith.constant 0 : i32
    %c0_i32_1 = arith.constant 0 : i32
    return %c0_i32, %c0_i32_0 : i32, i32
  }
  func.func @transform_27(%arg0: i32) -> (i32, i32) {
    %c0_i32 = arith.constant 0 : i32
    %c0_i32_0 = arith.constant 0 : i32
    %c0_i32_1 = arith.constant 0 : i32
    return %c0_i32, %c0_i32_0 : i32, i32
  }
  func.func @transform_28(%arg0: i32) -> (i32, i32) {
    %c0_i32 = arith.constant 0 : i32
    %c0_i32_0 = arith.constant 0 : i32
    %c0_i32_1 = arith.constant 0 : i32
    return %c0_i32, %c0_i32_0 : i32, i32
  }
  func.func @transform_29(%arg0: i32) -> (i32, i32) {
    %c0_i32 = arith.constant 0 : i32
    %c0_i32_0 = arith.constant 0 : i32
    %c0_i32_1 = arith.constant 0 : i32
    return %c0_i32, %c0_i32_0 : i32, i32
  }
  func.func @transform_30(%arg0: i32) -> (i32, i32) {
    %c0_i32 = arith.constant 0 : i32
    %c0_i32_0 = arith.constant 0 : i32
    %c0_i32_1 = arith.constant 0 : i32
    return %c0_i32, %c0_i32_0 : i32, i32
  }
  func.func @transform_31(%arg0: i32) -> (i32, i32) {
    %c0_i32 = arith.constant 0 : i32
    %c0_i32_0 = arith.constant 0 : i32
    %c0_i32_1 = arith.constant 0 : i32
    return %c0_i32, %c0_i32_0 : i32, i32
  }
  func.func @transform_32(%arg0: i32) -> (i32, i32) {
    %c0_i32 = arith.constant 0 : i32
    %c0_i32_0 = arith.constant 0 : i32
    %c0_i32_1 = arith.constant 0 : i32
    return %c0_i32, %c0_i32_0 : i32, i32
  }
  func.func @transform_33(%arg0: i32) -> (i32, i32) {
    %c0_i32 = arith.constant 0 : i32
    %c0_i32_0 = arith.constant 0 : i32
    %c0_i32_1 = arith.constant 0 : i32
    return %c0_i32, %c0_i32_0 : i32, i32
  }
  func.func @transform_34(%arg0: i32) -> (i32, i32) {
    %c0_i32 = arith.constant 0 : i32
    %c0_i32_0 = arith.constant 0 : i32
    %c0_i32_1 = arith.constant 0 : i32
    return %c0_i32, %c0_i32_0 : i32, i32
  }
  func.func @transform_35(%arg0: i32) -> (i32, i32) {
    %c0_i32 = arith.constant 0 : i32
    %c0_i32_0 = arith.constant 0 : i32
    %c0_i32_1 = arith.constant 0 : i32
    return %c0_i32, %c0_i32_0 : i32, i32
  }
  func.func @transform_36(%arg0: i32) -> (i32, i32) {
    %c0_i32 = arith.constant 0 : i32
    %c0_i32_0 = arith.constant 0 : i32
    %c0_i32_1 = arith.constant 0 : i32
    return %c0_i32, %c0_i32_0 : i32, i32
  }
  func.func @transform_37(%arg0: i32) -> (i32, i32) {
    %c0_i32 = arith.constant 0 : i32
    %c0_i32_0 = arith.constant 0 : i32
    %c0_i32_1 = arith.constant 0 : i32
    return %c0_i32, %c0_i32_0 : i32, i32
  }
  func.func @transform_38(%arg0: i32) -> (i32, i32) {
    %c0_i32 = arith.constant 0 : i32
    %c0_i32_0 = arith.constant 0 : i32
    %c0_i32_1 = arith.constant 0 : i32
    return %c0_i32, %c0_i32_0 : i32, i32
  }
  func.func @transform_39(%arg0: i32) -> (i32, i32, i32) {
    %c0_i32 = arith.constant 0 : i32
    %c0_i32_0 = arith.constant 0 : i32
    %c0_i32_1 = arith.constant 0 : i32
    return %arg0, %c0_i32, %c0_i32_0 : i32, i32, i32
  }
}

</mosaic_0001>

<bundles_post_ra>
// kernel: transformer_forward.1
= control target key start
LH: loop header
LB: loop body
LE: loop exit
PB: predicated region body
PF: predicated region fallthrough
CT: control target
= control target key end

     0   :  { %s5433_s6 = smov 1   ;;  %s5434_s10 = smov 2   ;;  %s6205_s0 = inlined_call_operand.smem [shape: u32[40], index: -1, kind: input, shape index: {}] }
   0x1   :  { %s5493_s5 = sld [smem:[%s6205_s0]]   ;;  %s5435_s14 = smov 3  }
   0x2   :  { %s5498_s9 = sld [smem:[%s6205_s0 + %s5433_s6]]   ;;  %s5436_s18 = smov 4  }
   0x3   :  { %s5503_s13 = sld [smem:[%s6205_s0 + %s5434_s10]]   ;;  %s5437_s22 = smov 5  }
   0x4   :  { %s5508_s17 = sld [smem:[%s6205_s0 + %s5435_s14]]   ;;  %s5438_s26 = smov 6  }
   0x5   :  { %s5513_s21 = sld [smem:[%s6205_s0 + %s5436_s18]]   ;;  %s5439_s30 = smov 7  }
   0x6   :  { %s5518_s25 = sld [smem:[%s6205_s0 + %s5437_s22]]   ;;  %s5440_s4 = smov 8  }
   0x7   :  { %6236 = sst [smem:[#allocation5_spill]] %s5493_s5  ;;  %s5441_s10 = smov 9  }
   0x8   :  { %6237 = sst [smem:[#allocation6_spill]] %s5498_s9  ;;  %s5442_s15 = smov 10  }
   0x9   :  { %6238 = sst [smem:[#allocation7_spill]] %s5503_s13  ;;  %s5443_s20 = smov 11  }
   0xa   :  { %6239 = sst [smem:[#allocation8_spill]] %s5508_s17  ;;  %s5445_s1 = smov 13  }
   0xb   :  { %s5523_s29 = sld [smem:[%s6205_s0 + %s5438_s26]]   ;;  %s5444_s26 = smov 12  }
   0xc   :  { %s5528_s3 = sld [smem:[%s6205_s0 + %s5439_s30]]   ;;  %s5446_s7 = smov 14  }
   0xd   :  { %s5533_s8 = sld [smem:[%s6205_s0 + %s5440_s4]]   ;;  %s5448_s22 = smov 16  }
   0xe   :  { %s5538_s14 = sld [smem:[%s6205_s0 + %s5441_s10]]   ;;  %s5449_s28 = smov 17  }
   0xf   :  { %s5543_s19 = sld [smem:[%s6205_s0 + %s5442_s15]]   ;;  %s5447_s15 = smov 15  }
  0x10   :  { %s5548_s24 = sld [smem:[%s6205_s0 + %s5443_s20]]  }
  0x11   :  { %s5553_s30 = sld [smem:[%s6205_s0 + %s5444_s26]]  }
  0x12   :  { %6240 = sst [smem:[#allocation9_spill]] %s5528_s3 }
  0x13   :  { %6241 = sst [smem:[#allocation10_spill]] %s5533_s8 }
  0x14   :  { %6242 = sst [smem:[#allocation11_spill]] %s5538_s14 }
  0x15   :  { %6243 = sst [smem:[#allocation12_spill]] %s5543_s19 }
  0x16   :  { %s5558_s6 = sld [smem:[%s6205_s0 + %s5445_s1]]  }
  0x17   :  { %s5563_s12 = sld [smem:[%s6205_s0 + %s5446_s7]]   ;;  %s5450_s7 = smov 18  }
  0x18   :  { %s5568_s20 = sld [smem:[%s6205_s0 + %s5447_s15]]   ;;  %s5451_s15 = smov 19  }
  0x19   :  { %s5573_s27 = sld [smem:[%s6205_s0 + %s5448_s22]]   ;;  %s5452_s22 = smov 20  }
  0x1a   :  { %s5578_s4 = sld [smem:[%s6205_s0 + %s5449_s28]]   ;;  %s5453_s28 = smov 21  }
  0x1b   :  { %s5583_s13 = sld [smem:[%s6205_s0 + %s5450_s7]]   ;;  %s5454_s7 = smov 22  }
  0x1c   :  { %6244 = sst [smem:[#allocation13_spill]] %s5558_s6 }
  0x1d   :  { %6245 = sst [smem:[#allocation14_spill]] %s5563_s12 }
  0x1e   :  { %s5588_s12 = sld [smem:[%s6205_s0 + %s5451_s15]]   ;;  %s5455_s15 = smov 23  }
  0x1f   :  { %6246 = sst [smem:[#allocation15_spill]] %s5573_s27 }
  0x20   :  { %6247 = sst [smem:[#allocation16_spill]] %s5578_s4 }
  0x21   :  { %6248 = sst [smem:[#allocation17_spill]] %s5583_s13 }
  0x22   :  { %s5593_s27 = sld [smem:[%s6205_s0 + %s5452_s22]]   ;;  %s5456_s22 = smov 24  }
  0x23   :  { %s5598_s4 = sld [smem:[%s6205_s0 + %s5453_s28]]   ;;  %s5457_s28 = smov 25  }
  0x24   :  { %6249 = sst [smem:[#allocation18_spill]] %s5588_s12 }
  0x25   :  { %s5603_s13 = sld [smem:[%s6205_s0 + %s5454_s7]]   ;;  %s5458_s7 = smov 26  }
  0x26   :  { %s5608_s12 = sld [smem:[%s6205_s0 + %s5455_s15]]   ;;  %s5459_s15 = smov 27  }
  0x28   :  { %6250 = sst [smem:[#allocation19_spill]] %s5593_s27 }
  0x29   :  { %6251 = sst [smem:[#allocation20_spill]] %s5598_s4 }
  0x2a   :  { %s5613_s27 = sld [smem:[%s6205_s0 + %s5456_s22]]   ;;  %s5460_s22 = smov 28  }
  0x2b   :  { %6252 = sst [smem:[#allocation21_spill]] %s5603_s13 }
  0x2c   :  { %6253 = sst [smem:[#allocation22_spill]] %s5608_s12 }
  0x2d   :  { %s5618_s4 = sld [smem:[%s6205_s0 + %s5457_s28]]   ;;  %s5461_s28 = smov 29  }
  0x2e   :  { %s5623_s13 = sld [smem:[%s6205_s0 + %s5458_s7]]   ;;  %s5462_s7 = smov 30  }
  0x2f   :  { %s5628_s12 = sld [smem:[%s6205_s0 + %s5459_s15]]   ;;  %s5463_s15 = smov 31  }
  0x30   :  { %6254 = sst [smem:[#allocation23_spill]] %s5613_s27 }
  0x31   :  { %s5633_s27 = sld [smem:[%s6205_s0 + %s5460_s22]]   ;;  %s5464_s22 = smov 32  }
  0x33   :  { %6255 = sst [smem:[#allocation24_spill]] %s5618_s4 }
  0x34   :  { %6256 = sst [smem:[#allocation25_spill]] %s5623_s13 }
  0x35   :  { %6257 = sst [smem:[#allocation26_spill]] %s5628_s12 }
  0x36   :  { %s5638_s4 = sld [smem:[%s6205_s0 + %s5461_s28]]   ;;  %s5465_s28 = smov 33  }
  0x37   :  { %6258 = sst [smem:[#allocation27_spill]] %s5633_s27 }
  0x38   :  { %s5643_s13 = sld [smem:[%s6205_s0 + %s5462_s7]]   ;;  %s5466_s7 = smov 34  }
  0x39   :  { %s5648_s12 = sld [smem:[%s6205_s0 + %s5463_s15]]   ;;  %s5467_s15 = smov 35  }
  0x3a   :  { %s5653_s27 = sld [smem:[%s6205_s0 + %s5464_s22]]   ;;  %s5468_s22 = smov 36  }
  0x3c   :  { %6259 = sst [smem:[#allocation28_spill]] %s5638_s4 }
  0x3d   :  { %s5658_s4 = sld [smem:[%s6205_s0 + %s5465_s28]]   ;;  %s5469_s28 = smov 37  }
  0x3e   :  { %6260 = sst [smem:[#allocation29_spill]] %s5643_s13 }
  0x3f   :  { %6261 = sst [smem:[#allocation30_spill]] %s5648_s12 }
  0x40   :  { %6262 = sst [smem:[#allocation31_spill]] %s5653_s27 }
  0x41   :  { %s5663_s13 = sld [smem:[%s6205_s0 + %s5466_s7]]   ;;  %s5470_s7 = smov 38  }
  0x42   :  { %s5668_s12 = sld [smem:[%s6205_s0 + %s5467_s15]]   ;;  %s5471_s15 = smov 39  }
  0x43   :  { %6263 = sst [smem:[#allocation32_spill]] %s5658_s4 }
  0x44   :  { %s5673_s27 = sld [smem:[%s6205_s0 + %s5468_s22]]  }
  0x45   :  { %s5678_s4 = sld [smem:[%s6205_s0 + %s5469_s28]]  }
  0x47   :  { %6264 = sst [smem:[#allocation33_spill]] %s5663_s13 }
  0x48   :  { %6265 = sst [smem:[#allocation34_spill]] %s5668_s12 }
  0x49   :  { %s5683_s13 = sld [smem:[%s6205_s0 + %s5470_s7]]  }
  0x4a   :  { %s5688_s12 = sld [smem:[%s6205_s0 + %s5471_s15]]  }
  0x4b   :  { %6266 = sst [smem:[#allocation35_spill]] %s5678_s4 }
  0x4c   :  { %84 = vsyncpa [#allocation3], 0 }
  0x4d   :  { %86 = vsyncpa [#allocation3 + $0x1], 0  ;;  %s5690_s22 = smov 0   ;;  %s5692_s23 = smov 0  }
  0x4e   :  { %s5694_s26 = smov 0   ;;  %s5696_s28 = smov 0  }
  0x4f LB: > { %s6267_s17 = sld [smem:[#allocation8_spill]]  ;;  %s6268_s14 = sld [smem:[#allocation11_spill]]  ;;  %s5427_s26 = sphi %s5694_s26, %s6311_s26   ;;  %s5423_s23 = sphi %s5692_s23, %s6310_s23   ;;  %s5419_s22 = sphi %s5690_s22, %s6309_s22   ;;  %s5431_s28 = sphi %s5696_s28, %s6312_s28  }
  0x50   : > { %s6269_s3 = sld [smem:[#allocation9_spill]]  ;;  %s5711_s0 = sadd.s32 4294967295, %s5431_s28  }
  0x51   : > { %s4659_s1 = sadd.s32 4294967294, %s5431_s28   ;;  %s5715_s2 = sadd.s32 1, %s5431_s28  }
  0x52   : > { %s933_s7 = sadd.s32 1, %s5427_s26  ;;  %s930_s10 = ssub.s32 %s5431_s28, %s5715_s2 }
  0x53   : > { %p943_p0 = scmp.ne.s32.totalorder %s5427_s26, %s5423_s23  ;;  %p931_p1 = scmp.eq.s32.totalorder %s930_s10, 0 }
  0x54   : > { %p944_p2 = scmp.eq.s32.totalorder %s5711_s0, 1  ;;  %p949_p3 = scmp.ne.s32.totalorder %s5423_s23, %s5419_s22 }
  0x55   : > { %p950_p4 = scmp.eq.s32.totalorder %s4659_s1, 1  ;;  %p4662_p7 = scmp.ge.s32.totalorder %s5431_s28, 1 }
  0x56   : > { %s5726_s11 = scalar_select %p931_p1, %s5427_s26, %s933_s7  }
  0x57   : > { %p5728_p5 = por %p944_p2, %p943_p0  ;;  %p5732_p6 = por %p950_p4, %p949_p3 }
  0x58   : > { %p1096_p8 = scmp.lt.s32.totalorder %s5431_s28, 3 }
  0x5a   : > { %p1097_p9 = pnand %p4662_p7, %p1096_p8 }
  0x5b   : > { %v1211_v0 = vld [vmem:[%s6267_s17] sm:$0xff] (!%p1097_p9)  ;;  %v1212_v1 = vld [vmem:[%s6267_s17 + $0x8] sm:$0xff] (!%p1097_p9)  ;;  %v1213_v2 = vld [vmem:[%s6267_s17 + $0x10] sm:$0xff] (!%p1097_p9)  ;;  %s6272_s5 = sld [smem:[#allocation5_spill]] (!%p1097_p9)  ;;  %v5472_v3 = vmov (!%p1097_p9), 0.0|0.0   ;;  %vm5473_vm0 = vmmov (!%p1097_p9), 0  }
  0x5c   : > { %1100 = sbr.rel (%p1097_p9) target bundleno = 7450 (0x1d1a), region = 176  ;;  %5131 = vmatprep.subr.bf16.mxu0 (!%p1097_p9), %v5472_v3  ;;  %v5132_v4 = vpack.c.bf16 (!%p1097_p9), %v1212_v1, %v1211_v0  ;;  %v1214_v5 = vld [vmem:[%s6267_s17 + $0x18] sm:$0xff] (!%p1097_p9)  ;;  %v5474_v6 = vmov (!%p1097_p9), 0.0   ;;  %p1197_p10 = scmp.lt.s32.totalorder (!%p1097_p9), %s5711_s0, 1  ;;  %vm1245_vm1 = vcmask (!%p1097_p9), 261120   ;;  %vm1342_vm2 = vcmask (!%p1097_p9), 64512  }
  0x5d   : > { %4866 = vmatprep.mubr.msk.f32.mxu0 (!%p1097_p9), %vm5473_vm0, %v5474_v6  ;;  %4869 = vmatprep.subr.mxu1 (!%p1097_p9), %v5474_v6  ;;  %v5135_v7 = vpack.c.bf16 (!%p1097_p9), %v1214_v5, %v1213_v2  ;;  %v4665_v9 = vld [vmem:[%s5513_s21] ss:$0 sm:$0xff] (!%p1097_p9)  ;;  %s6218_s10 = smov (!%p1097_p9), 104   ;;  %s6273_s9 = sld [smem:[#allocation6_spill]] (!%p1097_p9)  ;;  %vm2006_vm3 = vcmask (!%p1097_p9), 130048   ;;  %vm2008_vm4 = vcmask (!%p1097_p9), 195584  }
  0x5e   : > { %4871 = vmatprep.mubr.msk.f32.mxu1 (!%p1097_p9), %vm5473_vm0, %v5474_v6  ;;  %5133 = vmatpush3.bf16.msra.mxu0 (!%p1097_p9), %v5132_v4  ;;  %s6274_s8 = sld [smem:[#allocation10_spill]] (!%p1097_p9)  ;;  %s6275_s19 = sld [smem:[#allocation12_spill]] (!%p1097_p9)  ;;  %vm2204_vm5 = vcmask (!%p1097_p9), 523264   ;;  %vm4441_vm6 = vcmask (!%p1097_p9), 7168   ;;  %vm4529_vm7 = vcmask (!%p1097_p9), 32768  }
  0x5f   : > { %5134 = vmatprep.subr.bf16.mxu0 (!%p1097_p9), %v5472_v3  ;;  %s6276_s6 = sld [smem:[#allocation13_spill]] (!%p1097_p9)  ;;  %s6291_s17 = smov (!%p1097_p9), 112  }
  0x60   : > { %s6308_s4 = sld [smem:[#allocation35_spill]] (!%p1097_p9) }
  0x62   : > { %5136 = vmatpush3.bf16.msra.mxu0 (!%p1097_p9), %v5135_v7 }
  0x63   : > { %s5750_s18 = scalar_select %p1197_p10, %s5711_s0, 1  ;;  %4879 = vmatprep.subr.mxu0 %v5474_v6 }
  0x65   : > { %s6213_s1 = sshll.u32 %s5750_s18, 3 }
  0x66   : > { %s1200_s7 = scalar_lea.vmem %s6272_s5, %s6213_s1  ;;  %s6214_s1 = smov 96  }
  0x67   : > { %v5757_v8 = vld [vmem:[%s1200_s7] sm:$0xff]  ;;  %s6220_s7 = smov 120   ;;  %s6229_s5 = smov 112  }
  0x68   : > { %4867 = vmatmul.mubr.msk.f32.vlgmr.msra.gmra.mrb[0].mxu0 %vm1245_vm1, %v5757_v8 }
  0x69   : > { %4881 = vmatprep.mubr.msk.f32.mxu0 %vm5473_vm0, %v5474_v6 }
 0x13b   : > { %v1315_v10 = vpop.f32.mrb[0].mxu0 }
 0x13c   : > { %v5765_v11 = vadd.f32 %v4665_v9, %v1315_v10  ;;  %v4868_v12 = vpop.f32.mrb[1].mxu0 }
 0x13e   : > { %1332 = vrot.lane.b32.xlu1 %v5765_v11, %s6218_s10  ;;  %1328 = vrot.lane.b32.xlu0 %v5765_v11, %s6220_s7  ;;  %v1319_v13 = vmul.f32 0.35355338, %v5765_v11 }
 0x142   : > { %1340 = vrot.lane.b32.xlu1 %v5765_v11, %s6214_s1  ;;  %1330 = vrot.lane.b32.xlu0 %v5765_v11, %s6229_s5 }
 0x146   : > { %1321 = vrot.lane.b32.xlu1 %v1319_v13, %s6220_s7  ;;  %s6222_s7 = smov 24  }
 0x1b0   : > { %v5777_v14 = vpop.permute.xlu1 %1332  ;;  %v5779_v15 = vpop.permute.xlu0 %1328 }
 0x1b1   : > { %1417 = vrot.lane.b32.xlu0 %v5779_v15, %s6214_s1  ;;  %1569 = vrot.lane.b32.xlu1 %v5777_v14, %s6214_s1 }
 0x1b4   : > { %v1341_v16 = vpop.permute.xlu1 %1340  ;;  %v5785_v17 = vpop.permute.xlu0 %1330 }
 0x1b5   : > { %4870 = vmatpush3.xpose.msk.msra.mxu1 %vm1342_vm2, %v1341_v16  ;;  %1493 = vrot.lane.b32.xlu0 %v5785_v17, %s6214_s1  ;;  %s1203_s1 = scalar_lea.vmem %s6273_s9, %s5750_s18  ;;  %s6287_s9 = smov 24  }
 0x1b6   : > { %1325 = vrot.lane.b32.xlu1 %v1319_v13, %s6218_s10  ;;  %4874 = vmatprep.subr.mxu1 %v5474_v6  ;;  %v5813_v24 = vld [vmem:[%s1203_s1] ss:$0 sm:$0xff]  ;;  %s6216_s1 = smov 64   ;;  %s6224_s10 = smov 16  }
 0x1b8   : > { %4872 = vmatmul.mubr.msk.f32.vlgmr.msra.gmra.mrb[0].mxu1 %vm1342_vm2, %v1319_v13  ;;  %v1322_v18 = vpop.permute.xlu1 %1321 }
 0x1b9   : > { %1323 = vrot.lane.b32.xlu0 %v1319_v13, %s6229_s5  ;;  %4876 = vmatprep.mubr.msk.f32.mxu1 %vm5473_vm0, %v5474_v6 }
 0x223   : > { %v1418_v19 = vpop.permute.xlu0 %1417  ;;  %v1570_v20 = vpop.permute.xlu1 %1569 }
 0x224   : > { %4875 = vmatpush3.xpose.msk.msra.mxu1 %vm1342_vm2, %v1418_v19  ;;  %v1217_v19 = vld [vmem:[%s5518_s25 + $0x8] sm:$0xff] }
 0x225   : > { %4884 = vmatprep.subr.mxu1 %v5474_v6 }
 0x227   : > { %v1494_v21 = vpop.permute.xlu0 %1493  ;;  %4877 = vmatmul.mubr.msk.f32.vlgmr.msra.gmra.mrb[2].mxu1 %vm1342_vm2, %v1322_v18  ;;  %v1216_v18 = vld [vmem:[%s5518_s25] sm:$0xff] }
 0x228   : > { %4880 = vmatpush3.xpose.msk.msra.mxu0 %vm1342_vm2, %v1494_v21  ;;  %4885 = vmatpush3.xpose.msk.msra.mxu1 %vm1342_vm2, %v1570_v20  ;;  %v1326_v22 = vpop.permute.xlu1 %1325  ;;  %v5138_v20 = vpack.c.bf16 %v1217_v19, %v1216_v18  ;;  %v1218_v21 = vld [vmem:[%s5518_s25 + $0x10] sm:$0xff]  ;;  %v4686_v18 = vld [vmem:[%s6275_s19] ss:$0 sm:$0xff]  ;;  %s6294_s19 = sld [smem:[#allocation19_spill]] }
 0x229   : > { %4886 = vmatprep.mubr.msk.f32.mxu1 %vm5473_vm0, %v5474_v6  ;;  %4889 = vmatprep.subr.mxu0 %v5474_v6 }
 0x22a   : > { %4894 = vmatprep.subr.mxu1 %v5474_v6 }
 0x22b   : > { %v1324_v23 = vpop.permute.xlu0 %1323  ;;  %4887 = vmatmul.mubr.msk.f32.vlgmr.msra.gmra.mrb[4].mxu1 %vm1342_vm2, %v1326_v22  ;;  %v1219_v22 = vld [vmem:[%s5518_s25 + $0x18] sm:$0xff] }
 0x22c   : > { %4882 = vmatmul.mubr.msk.f32.vlgmr.msra.gmra.mrb[2].mxu0 %vm1342_vm2, %v1324_v23  ;;  %4896 = vmatprep.mubr.msk.f32.mxu1 %vm5473_vm0, %v5474_v6  ;;  %v5141_v23 = vpack.c.bf16 %v1219_v22, %v1218_v21 }
 0x22d   : > { %4891 = vmatprep.mubr.msk.f32.mxu0 %vm5473_vm0, %v5474_v6 }
 0x28b   : > { %v1413_v25 = vpop.f32.mrb[0].mxu1 }
 0x28c   : > { %v1414_v26 = vadd.f32 %v5813_v24, %v1413_v25  ;;  %v4873_v27 = vpop.f32.mrb[1].mxu1 }
 0x28e   : > { %v1645_v28 = vsel %vm1342_vm2, %v1414_v26, -inf }
 0x28f   : > { %1646 = vmax.xlane.f32.xlu0 %v1645_v28 }
 0x2fa   : > { %v1489_v29 = vpop.f32.mrb[2].mxu1 }
 0x2fb   : > { %v1490_v30 = vadd.f32 %v5813_v24, %v1489_v29  ;;  %v4878_v31 = vpop.f32.mrb[3].mxu1 }
 0x2fd   : > { %v1648_v32 = vsel %vm1342_vm2, %v1490_v30, -inf }
 0x2fe   : > { %1649 = vmax.xlane.f32.xlu1 %v1648_v32  ;;  %v1641_v33 = vpop.f32.mrb[4].mxu1 }
 0x2ff   : > { %v1565_v34 = vpop.f32.mrb[2].mxu0  ;;  %v4888_v35 = vpop.f32.mrb[5].mxu1  ;;  %v1642_v38 = vadd.f32 %v5813_v24, %v1641_v33 }
 0x300   : > { %v1566_v36 = vadd.f32 %v5813_v24, %v1565_v34  ;;  %v4883_v37 = vpop.f32.mrb[3].mxu0 }
 0x301   : > { %v1654_v40 = vsel %vm1342_vm2, %v1642_v38, -inf  ;;  %v4680_v37 = vld [vmem:[%s5523_s29] ss:$0 sm:$0xff] }
 0x302   : > { %v1651_v39 = vsel %vm1342_vm2, %v1566_v36, -inf }
 0x303   : > { %1652 = vmax.xlane.f32.xlu0 %v1651_v39 }
 0x307   : > { %1655 = vmax.xlane.f32.xlu0 %v1654_v40 }
 0x30f   : > { %1689 = vrot.lane.b32.xlu1 %v5765_v11, %s6216_s1 }
 0x31c   : > { %v1647_v41 = vpop.xlane.xlu0 %1646 }
 0x31d   : > { %v1657_v42 = vsub.f32 %v1414_v26, %v1647_v41 }
 0x31f   : > { %v1661_v43 = vmul.f32 1.442695, %v1657_v42 }
 0x321   : > { %5309 = vpow2.f32 %v1661_v43 }
 0x32b   : > { %v5310_v44 = vpop.eup %5309 }
 0x32c   : > { %v1669_v45 = vsel %vm1342_vm2, %v5310_v44, 0.0 }
 0x333   : > { %1670 = vadd.xlane.f32.xlu1 %v1669_v45 }
 0x38b   : > { %v1650_v46 = vpop.xlane.xlu1 %1649 }
 0x38c   : > { %v1658_v47 = vsub.f32 %v1490_v30, %v1650_v46 }
 0x38e   : > { %v1663_v48 = vmul.f32 1.442695, %v1658_v47 }
 0x38f   : > { %v1690_v49 = vpop.permute.xlu1 %1689 }
 0x390   : > { %5311 = vpow2.f32 %v1663_v48  ;;  %4890 = vmatpush3.msra.mxu0 %v1690_v49  ;;  %v1653_v50 = vpop.xlane.xlu0 %1652  ;;  %v1221_v48 = vld [vmem:[%s6269_s3] sm:$0xff]  ;;  %v1222_v49 = vld [vmem:[%s6269_s3 + $0x8] sm:$0xff] }
 0x391   : > { %v1659_v51 = vsub.f32 %v1566_v36, %v1653_v50  ;;  %4899 = vmatprep.subr.mxu0 %v5474_v6  ;;  %v5144_v50 = vpack.c.bf16 %v1222_v49, %v1221_v48 }
 0x393   : > { %v1665_v52 = vmul.f32 1.442695, %v1659_v51  ;;  %v1224_v51 = vld [vmem:[%s6269_s3 + $0x18] sm:$0xff] }
 0x394   : > { %v1656_v53 = vpop.xlane.xlu0 %1655 }
 0x395   : > { %5313 = vpow2.f32 %v1665_v52  ;;  %v1660_v54 = vsub.f32 %v1642_v38, %v1656_v53  ;;  %v1226_v53 = vld [vmem:[%s6268_s14] sm:$0xff] }
 0x397   : > { %v1667_v55 = vmul.f32 1.442695, %v1660_v54  ;;  %v1227_v54 = vld [vmem:[%s6268_s14 + $0x8] sm:$0xff] }
 0x399   : > { %5315 = vpow2.f32 %v1667_v55  ;;  %v1228_v55 = vld [vmem:[%s6268_s14 + $0x10] sm:$0xff] }
 0x39a   : > { %v5312_v56 = vpop.eup %5311 }
 0x39b   : > { %v1672_v57 = vsel %vm1342_vm2, %v5312_v56, 0.0 }
 0x39c   : > { %1673 = vadd.xlane.f32.xlu0 %v1672_v57  ;;  %v1229_v57 = vld [vmem:[%s6268_s14 + $0x18] sm:$0xff] }
 0x39f   : > { %v5314_v58 = vpop.eup %5313 }
 0x3a0   : > { %v1675_v59 = vsel %vm1342_vm2, %v5314_v58, 0.0 }
 0x3a1   : > { %1676 = vadd.xlane.f32.xlu1 %v1675_v59  ;;  %v1230_v59 = vld [vmem:[%s6268_s14 + $0x20] sm:$0xff] }
 0x3a3   : > { %v5316_v60 = vpop.eup %5315 }
 0x3a4   : > { %v1678_v61 = vsel %vm1342_vm2, %v5316_v60, 0.0 }
 0x3a5   : > { %1679 = vadd.xlane.f32.xlu0 %v1678_v61 }
 0x3b2   : > { %1841 = vrot.lane.b32.xlu1 %v5785_v17, %s6216_s1 }
 0x3b6   : > { %1917 = vrot.lane.b32.xlu1 %v5777_v14, %s6216_s1 }
 0x3bb   : > { %1765 = vrot.lane.b32.xlu0 %v5779_v15, %s6216_s1  ;;  %s6226_s1 = smov 8  }
 0x3c0   : > { %v1671_v62 = vpop.xlane.xlu1 %1670 }
 0x3c1   : > { %5317 = vrcp.f32 %v1671_v62 }
 0x3cb   : > { %v5318_v63 = vpop.eup %5317 }
 0x3cc   : > { %v1685_v0 = vmul.f32 %v5318_v63, %v5310_v44 }
 0x3ce   : > { %4892 = vmatmul.mubr.msk.f32.vlgmr.msra.gmra.mrb[4].mxu0 %vm1342_vm2, %v1685_v0 }
 0x3cf   : > { %4901 = vmatprep.mubr.msk.f32.mxu0 %vm5473_vm0, %v5474_v6 }
 0x429   : > { %v1674_v1 = vpop.xlane.xlu0 %1673 }
 0x42a   : > { %5319 = vrcp.f32 %v1674_v1  ;;  %v4682_v1 = vld [vmem:[%s5548_s24] ss:$0 sm:$0xff] }
 0x42e   : > { %v1677_v2 = vpop.xlane.xlu1 %1676 }
 0x42f   : > { %5321 = vrcp.f32 %v1677_v2 }
 0x432   : > { %v1842_v4 = vpop.permute.xlu1 %1841  ;;  %v1680_v5 = vpop.xlane.xlu0 %1679 }
 0x433   : > { %5323 = vrcp.f32 %v1680_v5  ;;  %4900 = vmatpush3.msra.mxu0 %v1842_v4  ;;  %v4683_v5 = vld [vmem:[%s5553_s30] ss:$0 sm:$0xff] }
 0x434   : > { %v5320_v7 = vpop.eup %5319  ;;  %5137 = vmatprep.subr.bf16.mxu0 %v5472_v3 }
 0x435   : > { %v1686_v9 = vmul.f32 %v5320_v7, %v5312_v56  ;;  %v5150_v56 = vpack.c.bf16 %v1227_v54, %v1226_v53 }
 0x436   : > { %v1766_v10 = vpop.permute.xlu0 %1765  ;;  %v1918_v11 = vpop.permute.xlu1 %1917 }
 0x437   : > { %4895 = vmatpush3.msra.mxu1 %v1766_v10  ;;  %v1232_v10 = vld [vmem:[%s6268_s14 + $0x30] sm:$0xff] }
 0x438   : > { %4897 = vmatmul.mubr.msk.f32.vlgmr.msra.gmra.mrb[6].mxu1 %vm1342_vm2, %v1686_v9  ;;  %4904 = vmatprep.subr.mxu1 %v5474_v6 }
 0x439   : > { %v5322_v12 = vpop.eup %5321  ;;  %4905 = vmatpush3.msra.mxu1 %v1918_v11  ;;  %4906 = vmatprep.mubr.msk.f32.mxu1 %vm5473_vm0, %v5474_v6  ;;  %v1233_v11 = vld [vmem:[%s6268_s14 + $0x38] sm:$0xff] }
 0x43a   : > { %v1687_v13 = vmul.f32 %v5322_v12, %v5314_v58  ;;  %5143 = vmatprep.subr.bf16.mxu1 %v5472_v3  ;;  %v5153_v58 = vpack.c.bf16 %v1229_v57, %v1228_v55  ;;  %v5159_v12 = vpack.c.bf16 %v1233_v11, %v1232_v10 }
 0x43c   : > { %4902 = vmatmul.mubr.msk.f32.vlgmr.msra.gmra.mrb[6].mxu0 %vm1342_vm2, %v1687_v13  ;;  %v4684_v13 = vld [vmem:[%s6274_s8] ss:$0 sm:$0xff]  ;;  %s6286_s8 = smov 16  }
 0x43d   : > { %v5324_v14 = vpop.eup %5323  ;;  %4917 = vmatprep.mubr.msk.f32.mxu0 %vm5473_vm0, %v5474_v6  ;;  %5139 = vmatpush3.bf16.msra.mxu0 %v5138_v20 }
 0x43e   : > { %v1688_v15 = vmul.f32 %v5324_v14, %v5316_v60  ;;  %5140 = vmatprep.subr.bf16.mxu0 %v5472_v3  ;;  %v1231_v60 = vld [vmem:[%s6268_s14 + $0x28] sm:$0xff]  ;;  %s6289_s14 = sld [smem:[#allocation21_spill]] }
 0x43f   : > { %v5156_v61 = vpack.c.bf16 %v1231_v60, %v1230_v59 }
 0x440   : > { %4907 = vmatmul.mubr.msk.f32.vlgmr.msra.gmra.mrb[8].mxu1 %vm1342_vm2, %v1688_v15 }
 0x441   : > { %4928 = vmatprep.mubr.msk.f32.mxu1 %vm5473_vm0, %v5474_v6  ;;  %5142 = vmatpush3.bf16.msra.mxu0 %v5141_v23 }
 0x442   : > { %5149 = vmatprep.subr.bf16.mxu0 %v5472_v3  ;;  %5145 = vmatpush3.bf16.msra.mxu1 %v5144_v50 }
 0x443   : > { %5146 = vmatprep.subr.bf16.mxu1 %v5472_v3 }
 0x4a1   : > { %v1761_v16 = vpop.f32.mrb[4].mxu0 }
 0x4a2   : > { %v4893_v17 = vpop.f32.mrb[5].mxu0 }
 0x50b   : > { %v1837_v25 = vpop.f32.mrb[6].mxu1 }
 0x50c   : > { %1994 = vrot.lane.b32.xlu0 %v1837_v25, %s6226_s1  ;;  %v4898_v26 = vpop.f32.mrb[7].mxu1  ;;  %s6279_s1 = smov 120  }
 0x50f   : > { %v1913_v27 = vpop.f32.mrb[6].mxu0 }
 0x510   : > { %1998 = vrot.lane.b32.xlu1 %v1913_v27, %s6224_s10  ;;  %v4903_v28 = vpop.f32.mrb[7].mxu0  ;;  %s6278_s10 = sld [smem:[#allocation15_spill]] }
 0x513   : > { %v1989_v29 = vpop.f32.mrb[8].mxu1 }
 0x514   : > { %2002 = vrot.lane.b32.xlu0 %v1989_v29, %s6222_s7  ;;  %v4908_v30 = vpop.f32.mrb[9].mxu1  ;;  %s6277_s7 = sld [smem:[#allocation14_spill]] }
 0x515   : > { %v2306_v30 = vld [vmem:[%s5568_s20] sm:$0xff] }
 0x57e   : > { %v1995_v31 = vpop.permute.xlu0 %1994 }
 0x57f   : > { %v2005_v33 = vsel %vm1342_vm2, %v1761_v16, %v1995_v31  ;;  %v2307_v31 = vld [vmem:[%s5568_s20 + $0x8] sm:$0xff] }
 0x582   : > { %v1999_v32 = vpop.permute.xlu1 %1998 }
 0x583   : > { %v2007_v34 = vsel %vm2006_vm3, %v2005_v33, %v1999_v32  ;;  %v5162_v32 = vpack.c.bf16 %v2307_v31, %v2306_v30  ;;  %v2308_v33 = vld [vmem:[%s5568_s20 + $0x10] sm:$0xff] }
 0x586   : > { %v2003_v35 = vpop.permute.xlu0 %2002 }
 0x587   : > { %v2009_v36 = vsel %vm2008_vm4, %v2007_v34, %v2003_v35  ;;  %v2309_v34 = vld [vmem:[%s5568_s20 + $0x18] sm:$0xff] }
 0x588   : > { %4918 = vmatmul.mubr.msk.f32.vlgmr.msra.gmra.mrb[8].mxu0 %vm1245_vm1, %v2009_v36  ;;  %v5165_v35 = vpack.c.bf16 %v2309_v34, %v2308_v33 }
 0x589   : > { %4947 = vmatprep.mubr.msk.f32.mxu0 %vm5473_vm0, %v5474_v6  ;;  %5151 = vmatpush3.bf16.msra.mxu0 %v5150_v56 }
 0x58a   : > { %5152 = vmatprep.subr.bf16.mxu0 %v5472_v3 }
 0x58d   : > { %5154 = vmatpush3.bf16.msra.mxu0 %v5153_v58 }
 0x58e   : > { %5155 = vmatprep.subr.bf16.mxu0 %v5472_v3 }
 0x591   : > { %5157 = vmatpush3.bf16.msra.mxu0 %v5156_v61 }
 0x592   : > { %5158 = vmatprep.subr.bf16.mxu0 %v5472_v3 }
 0x595   : > { %5160 = vmatpush3.bf16.msra.mxu0 %v5159_v12 }
 0x596   : > { %4971 = vmatprep.subr.mxu0 %v5474_v6 }
 0x65b   : > { %v2085_v38 = vpop.f32.mrb[8].mxu0 }
 0x65c   : > { %v2086_v39 = vadd.f32 %v4680_v37, %v2085_v38  ;;  %v4919_v40 = vpop.f32.mrb[9].mxu0 }
 0x65e   : > { %v2089_v41 = vadd.f32 %v2086_v39, %v5757_v8  ;;  %v1223_v8 = vld [vmem:[%s6269_s3 + $0x10] sm:$0xff]  ;;  %v4688_v39 = vld [vmem:[%s6276_s6] ss:$0 sm:$0xff]  ;;  %s6280_s3 = smov 104   ;;  %s6285_s6 = smov 8  }
 0x65f   : > { %v5147_v52 = vpack.c.bf16 %v1224_v51, %v1223_v8 }
 0x660   : > { %v2090_v42 = vsel %vm1245_vm1, %v2089_v41, 0.0 }
 0x661   : > { %2091 = vadd.xlane.f32.xlu1 %v2090_v42  ;;  %5148 = vmatpush3.bf16.msra.mxu1 %v5147_v52  ;;  %v4689_v42 = vld [vmem:[%s6277_s7] ss:$0 sm:$0xff]  ;;  %s6281_s7 = smov 96  }
 0x662   : > { %5161 = vmatprep.subr.bf16.mxu1 %v5472_v3 }
 0x6ee   : > { %v2092_v43 = vpop.xlane.xlu1 %2091 }
 0x6ef   : > { %v2094_v44 = vmul.f32 0.03125, %v2092_v43 }
 0x6f1   : > { %v2095_v45 = vsub.f32 %v2089_v41, %v2094_v44 }
 0x6f3   : > { %v2096_v46 = vmul.f32 %v2095_v45, %v2095_v45 }
 0x6f5   : > { %v2097_v47 = vsel %vm1245_vm1, %v2096_v46, 0.0 }
 0x6f6   : > { %2098 = vadd.xlane.f32.xlu0 %v2097_v47 }
 0x783   : > { %v2099_v62 = vpop.xlane.xlu0 %2098 }
 0x784   : > { %v2100_v63 = vmul.f32 0.03125, %v2099_v62 }
 0x786   : > { %v2101_v0 = vadd.f32 1e-05, %v2100_v63 }
 0x788   : > { %5325 = vrsqrt.f32 %v2101_v0 }
 0x792   : > { %v5326_v2 = vpop.eup %5325 }
 0x793   : > { %v2109_v4 = vmul.f32 %v5326_v2, %v4682_v1 }
 0x795   : > { %v2110_v7 = vmul.f32 %v2109_v4, %v2095_v45  ;;  %v4690_v45 = vld [vmem:[%s6278_s10] ss:$0 sm:$0xff]  ;;  %s6282_s10 = smov 64  }
 0x797   : > { %v2117_v9 = vadd.f32 %v4683_v5, %v2110_v7 }
 0x799   : > { %4929 = vmatmul.mubr.msk.f32.vlgmr.msra.gmra.mrb[10].mxu1 %vm1245_vm1, %v2117_v9 }
 0x79a   : > { %4958 = vmatprep.mubr.msk.f32.mxu1 %vm5473_vm0, %v5474_v6  ;;  %5163 = vmatpush3.bf16.msra.mxu1 %v5162_v32 }
 0x79b   : > { %5164 = vmatprep.subr.bf16.mxu1 %v5472_v3 }
 0x79e   : > { %5166 = vmatpush3.bf16.msra.mxu1 %v5165_v35 }
 0x79f   : > { %4961 = vmatprep.subr.mxu1 %v5474_v6 }
 0x86c   : > { %v2193_v14 = vpop.f32.mrb[10].mxu1 }
 0x86d   : > { %v2194_v15 = vadd.f32 %v4684_v13, %v2193_v14  ;;  %v4930_v16 = vpop.f32.mrb[11].mxu1 }
 0x86f   : > { %v2197_v17 = vmax.f32 %v2194_v15, 0.0 }
 0x871   : > { %4948 = vmatmul.mubr.msk.f32.vlgmr.msra.gmra.mrb[10].mxu0 %vm2204_vm5, %v2197_v17 }
 0x872   : > { %4973 = vmatprep.mubr.msk.f32.mxu0 %vm5473_vm0, %v5474_v6 }
 0x944   : > { %v2274_v19 = vpop.f32.mrb[10].mxu0 }
 0x945   : > { %v2275_v20 = vadd.f32 %v4686_v18, %v2274_v19  ;;  %v4949_v21 = vpop.f32.mrb[11].mxu0 }
 0x947   : > { %v2278_v22 = vadd.f32 %v2275_v20, %v2117_v9 }
 0x949   : > { %v2279_v23 = vsel %vm1245_vm1, %v2278_v22, 0.0 }
 0x94a   : > { %2280 = vadd.xlane.f32.xlu0 %v2279_v23 }
 0x9d7   : > { %v2281_v25 = vpop.xlane.xlu0 %2280 }
 0x9d8   : > { %v2282_v26 = vmul.f32 0.03125, %v2281_v25 }
 0x9da   : > { %v2283_v27 = vsub.f32 %v2278_v22, %v2282_v26 }
 0x9dc   : > { %v2284_v28 = vmul.f32 %v2283_v27, %v2283_v27 }
 0x9de   : > { %v2285_v29 = vsel %vm1245_vm1, %v2284_v28, 0.0 }
 0x9df   : > { %2286 = vadd.xlane.f32.xlu1 %v2285_v29 }
 0xa6c   : > { %v2287_v36 = vpop.xlane.xlu1 %2286 }
 0xa6d   : > { %v2288_v37 = vmul.f32 0.03125, %v2287_v36 }
 0xa6f   : > { %v2289_v38 = vadd.f32 1e-05, %v2288_v37 }
 0xa71   : > { %5327 = vrsqrt.f32 %v2289_v38 }
 0xa7b   : > { %v5328_v40 = vpop.eup %5327 }
 0xa7c   : > { %v2297_v41 = vmul.f32 %v5328_v40, %v4688_v39 }
 0xa7e   : > { %v2298_v43 = vmul.f32 %v2297_v41, %v2283_v27 }
 0xa80   : > { %v5908_v44 = vadd.f32 %v4689_v42, %v2298_v43 }
 0xa82   : > { %4959 = vmatmul.mubr.msk.f32.vlgmr.msra.gmra.mrb[12].mxu1 %vm1245_vm1, %v5908_v44 }
 0xa83   : > { %4963 = vmatprep.mubr.msk.f32.mxu1 %vm5473_vm0, %v5474_v6 }
 0xb55   : > { %v2426_v46 = vpop.f32.mrb[12].mxu1 }
 0xb56   : > { %v2427_v47 = vadd.f32 %v4690_v45, %v2426_v46  ;;  %v4960_v48 = vpop.f32.mrb[13].mxu1 }
 0xb58   : > { %2441 = vrot.lane.b32.xlu1 %v2427_v47, %s6229_s5  ;;  %2439 = vrot.lane.b32.xlu0 %v2427_v47, %s6279_s1  ;;  %v2430_v49 = vmul.f32 0.35355338, %v2427_v47 }
 0xb5c   : > { %2443 = vrot.lane.b32.xlu1 %v2427_v47, %s6280_s3  ;;  %2445 = vrot.lane.b32.xlu0 %v2427_v47, %s6281_s7 }
 0xb60   : > { %2432 = vrot.lane.b32.xlu0 %v2430_v49, %s6279_s1 }
 0xbca   : > { %v5920_v50 = vpop.permute.xlu1 %2441  ;;  %v2440_v8 = vpop.permute.xlu0 %2439 }
 0xbcb   : > { %2521 = vrot.lane.b32.xlu1 %v2440_v8, %s6281_s7 }
 0xbce   : > { %v5923_v51 = vpop.permute.xlu1 %2443  ;;  %v2446_v52 = vpop.permute.xlu0 %2445 }
 0xbcf   : > { %2597 = vrot.lane.b32.xlu1 %v5920_v50, %s6281_s7  ;;  %4962 = vmatpush3.xpose.msk.msra.mxu1 %vm1342_vm2, %v2446_v52 }
 0xbd0   : > { %2673 = vrot.lane.b32.xlu0 %v5923_v51, %s6281_s7  ;;  %4966 = vmatprep.subr.mxu1 %v5474_v6 }
 0xbd2   : > { %4964 = vmatmul.mubr.msk.f32.vlgmr.msra.gmra.mrb[14].mxu1 %vm1342_vm2, %v2430_v49  ;;  %v2433_v54 = vpop.permute.xlu0 %2432 }
 0xbd3   : > { %2434 = vrot.lane.b32.xlu1 %v2430_v49, %s6229_s5  ;;  %4968 = vmatprep.mubr.msk.f32.mxu1 %vm5473_vm0, %v5474_v6  ;;  %s6284_s5 = sld [smem:[#allocation20_spill]] }
 0xbd4   : > { %2436 = vrot.lane.b32.xlu0 %v2430_v49, %s6280_s3 }
 0xc3d   : > { %v2522_v53 = vpop.permute.xlu1 %2521 }
 0xc3e   : > { %4967 = vmatpush3.xpose.msk.msra.mxu1 %vm1342_vm2, %v2522_v53 }
 0xc3f   : > { %4976 = vmatprep.subr.mxu1 %v5474_v6 }
 0xc41   : > { %v2598_v55 = vpop.permute.xlu1 %2597  ;;  %4969 = vmatmul.mubr.msk.f32.vlgmr.msra.gmra.mrb[16].mxu1 %vm1342_vm2, %v2433_v54 }
 0xc42   : > { %v2674_v56 = vpop.permute.xlu0 %2673  ;;  %4972 = vmatpush3.xpose.msk.msra.mxu0 %vm1342_vm2, %v2598_v55  ;;  %4978 = vmatprep.mubr.msk.f32.mxu1 %vm5473_vm0, %v5474_v6 }
 0xc43   : > { %4977 = vmatpush3.xpose.msk.msra.mxu1 %vm1342_vm2, %v2674_v56  ;;  %4981 = vmatprep.subr.mxu0 %v5474_v6 }
 0xc44   : > { %4986 = vmatprep.subr.mxu1 %v5474_v6 }
 0xc45   : > { %v2435_v57 = vpop.permute.xlu1 %2434 }
 0xc46   : > { %v2437_v58 = vpop.permute.xlu0 %2436  ;;  %4974 = vmatmul.mubr.msk.f32.vlgmr.msra.gmra.mrb[12].mxu0 %vm1342_vm2, %v2435_v57 }
 0xc47   : > { %4979 = vmatmul.mubr.msk.f32.vlgmr.msra.gmra.mrb[18].mxu1 %vm1342_vm2, %v2437_v58  ;;  %4983 = vmatprep.mubr.msk.f32.mxu0 %vm5473_vm0, %v5474_v6 }
 0xc48   : > { %4988 = vmatprep.mubr.msk.f32.mxu1 %vm5473_vm0, %v5474_v6 }
 0xca5   : > { %v2517_v59 = vpop.f32.mrb[14].mxu1 }
 0xca6   : > { %v2518_v60 = vadd.f32 %v5813_v24, %v2517_v59  ;;  %v4965_v61 = vpop.f32.mrb[15].mxu1 }
 0xca8   : > { %v2749_v62 = vsel %vm1342_vm2, %v2518_v60, -inf }
 0xca9   : > { %2750 = vmax.xlane.f32.xlu1 %v2749_v62 }
 0xd14   : > { %v2593_v63 = vpop.f32.mrb[16].mxu1 }
 0xd15   : > { %v2594_v0 = vadd.f32 %v5813_v24, %v2593_v63  ;;  %v4970_v1 = vpop.f32.mrb[17].mxu1 }
 0xd16   : > { %v2321_v1 = vld [vmem:[%s6284_s5] sm:$0xff] }
 0xd17   : > { %v2752_v2 = vsel %vm1342_vm2, %v2594_v0, -inf }
 0xd18   : > { %2753 = vmax.xlane.f32.xlu0 %v2752_v2  ;;  %v2322_v2 = vld [vmem:[%s6284_s5 + $0x8] sm:$0xff] }
 0xd19   : > { %v2669_v4 = vpop.f32.mrb[12].mxu0 }
 0xd1a   : > { %v2670_v5 = vadd.f32 %v5813_v24, %v2669_v4  ;;  %v2745_v7 = vpop.f32.mrb[18].mxu1  ;;  %v4975_v9 = vpop.f32.mrb[13].mxu0 }
 0xd1b   : > { %v2746_v10 = vadd.f32 %v5813_v24, %v2745_v7  ;;  %v4980_v11 = vpop.f32.mrb[19].mxu1  ;;  %v5180_v7 = vpack.c.bf16 %v2322_v2, %v2321_v1 }
 0xd1c   : > { %v2755_v12 = vsel %vm1342_vm2, %v2670_v5, -inf  ;;  %v2323_v11 = vld [vmem:[%s6284_s5 + $0x10] sm:$0xff] }
 0xd1d   : > { %v2758_v13 = vsel %vm1342_vm2, %v2746_v10, -inf  ;;  %2756 = vmax.xlane.f32.xlu0 %v2755_v12  ;;  %v2324_v12 = vld [vmem:[%s6284_s5 + $0x18] sm:$0xff]  ;;  %s6290_s5 = sld [smem:[#allocation18_spill]] }
 0xd1e   : > { %2759 = vmax.xlane.f32.xlu1 %v2758_v13 }
 0xd2f   : > { %2869 = vrot.lane.b32.xlu1 %v2440_v8, %s6282_s10 }
 0xd33   : > { %2793 = vrot.lane.b32.xlu0 %v2427_v47, %s6282_s10 }
 0xd36   : > { %v2751_v14 = vpop.xlane.xlu1 %2750 }
 0xd37   : > { %v2761_v15 = vsub.f32 %v2518_v60, %v2751_v14  ;;  %v5183_v14 = vpack.c.bf16 %v2324_v12, %v2323_v11 }
 0xd39   : > { %v2765_v16 = vmul.f32 1.442695, %v2761_v15 }
 0xd3b   : > { %5329 = vpow2.f32 %v2765_v16 }
 0xd45   : > { %v5330_v17 = vpop.eup %5329 }
 0xd46   : > { %v2773_v18 = vsel %vm1342_vm2, %v5330_v17, 0.0 }
 0xd52   : > { %2774 = vadd.xlane.f32.xlu0 %v2773_v18 }
 0xda5   : > { %v2754_v24 = vpop.xlane.xlu0 %2753 }
 0xda6   : > { %v2762_v19 = vsub.f32 %v2594_v0, %v2754_v24 }
 0xda8   : > { %v2767_v20 = vmul.f32 1.442695, %v2762_v19 }
 0xdaa   : > { %5331 = vpow2.f32 %v2767_v20  ;;  %v2757_v21 = vpop.xlane.xlu0 %2756 }
 0xdab   : > { %v2760_v22 = vpop.xlane.xlu1 %2759  ;;  %v2763_v23 = vsub.f32 %v2670_v5, %v2757_v21 }
 0xdac   : > { %v2764_v25 = vsub.f32 %v2746_v10, %v2760_v22  ;;  %v4710_v22 = vld [vmem:[%s6289_s14] ss:$0 sm:$0xff]  ;;  %s6292_s14 = sld [smem:[#allocation28_spill]] }
 0xdad   : > { %v2769_v26 = vmul.f32 1.442695, %v2763_v23 }
 0xdae   : > { %v2771_v27 = vmul.f32 1.442695, %v2764_v25  ;;  %v2794_v28 = vpop.permute.xlu0 %2793 }
 0xdaf   : > { %5333 = vpow2.f32 %v2769_v26  ;;  %v2870_v29 = vpop.permute.xlu1 %2869  ;;  %4982 = vmatpush3.msra.mxu0 %v2794_v28 }
 0xdb0   : > { %5335 = vpow2.f32 %v2771_v27  ;;  %4987 = vmatpush3.msra.mxu1 %v2870_v29  ;;  %4991 = vmatprep.subr.mxu0 %v5474_v6 }
 0xdb1   : > { %4996 = vmatprep.subr.mxu1 %v5474_v6 }
 0xdb4   : > { %v5332_v30 = vpop.eup %5331 }
 0xdb5   : > { %v2776_v31 = vsel %vm1342_vm2, %v5332_v30, 0.0 }
 0xdb6   : > { %2777 = vadd.xlane.f32.xlu1 %v2776_v31  ;;  %v2316_v31 = vld [vmem:[%s6290_s5] sm:$0xff] }
 0xdb9   : > { %v5334_v32 = vpop.eup %5333 }
 0xdba   : > { %v5336_v33 = vpop.eup %5335  ;;  %v2779_v34 = vsel %vm1342_vm2, %v5334_v32, 0.0 }
 0xdbb   : > { %v2782_v35 = vsel %vm1342_vm2, %v5336_v33, 0.0  ;;  %2780 = vadd.xlane.f32.xlu0 %v2779_v34  ;;  %v2318_v34 = vld [vmem:[%s6290_s5 + $0x10] sm:$0xff] }
 0xdbc   : > { %2783 = vadd.xlane.f32.xlu1 %v2782_v35  ;;  %v2319_v35 = vld [vmem:[%s6290_s5 + $0x18] sm:$0xff] }
 0xdcd   : > { %2945 = vrot.lane.b32.xlu1 %v5920_v50, %s6282_s10 }
 0xdd1   : > { %3021 = vrot.lane.b32.xlu0 %v5923_v51, %s6282_s10  ;;  %s6283_s10 = sld [smem:[#allocation16_spill]] }
 0xdd7   : > { %v2311_v52 = vld [vmem:[%s6283_s10] sm:$0xff]  ;;  %v2312_v53 = vld [vmem:[%s6283_s10 + $0x8] sm:$0xff]  ;;  %v2313_v55 = vld [vmem:[%s6283_s10 + $0x10] sm:$0xff] }
 0xdd8   : > { %v5168_v54 = vpack.c.bf16 %v2312_v53, %v2311_v52  ;;  %v2314_v56 = vld [vmem:[%s6283_s10 + $0x18] sm:$0xff]  ;;  %s6288_s10 = sld [smem:[#allocation17_spill]] }
 0xdd9   : > { %v5171_v57 = vpack.c.bf16 %v2314_v56, %v2313_v55 }
 0xdde   : > { %v4704_v15 = vld [vmem:[%s6288_s10] ss:$0 sm:$0xff]  ;;  %s6293_s10 = sld [smem:[#allocation29_spill]] }
 0xddf   : > { %v2775_v36 = vpop.xlane.xlu0 %2774 }
 0xde0   : > { %5337 = vrcp.f32 %v2775_v36  ;;  %v5177_v36 = vpack.c.bf16 %v2319_v35, %v2318_v34 }
 0xdea   : > { %v5338_v37 = vpop.eup %5337 }
 0xdeb   : > { %v2789_v38 = vmul.f32 %v5338_v37, %v5330_v17 }
 0xded   : > { %4984 = vmatmul.mubr.msk.f32.vlgmr.msra.gmra.mrb[14].mxu0 %vm1342_vm2, %v2789_v38 }
 0xdee   : > { %4993 = vmatprep.mubr.msk.f32.mxu0 %vm5473_vm0, %v5474_v6 }
 0xe43   : > { %v2778_v39 = vpop.xlane.xlu1 %2777 }
 0xe44   : > { %5339 = vrcp.f32 %v2778_v39 }
 0xe48   : > { %v2781_v40 = vpop.xlane.xlu0 %2780 }
 0xe49   : > { %v2784_v41 = vpop.xlane.xlu1 %2783  ;;  %5341 = vrcp.f32 %v2781_v40  ;;  %v4706_v40 = vld [vmem:[%s6292_s14] ss:$0 sm:$0xff]  ;;  %s6303_s14 = sld [smem:[#allocation34_spill]] }
 0xe4a   : > { %5343 = vrcp.f32 %v2784_v41 }
 0xe4c   : > { %v3022_v46 = vpop.permute.xlu0 %3021 }
 0xe4d   : > { %v2946_v42 = vpop.permute.xlu1 %2945 }
 0xe4e   : > { %v5340_v43 = vpop.eup %5339  ;;  %4992 = vmatpush3.msra.mxu0 %v2946_v42 }
 0xe4f   : > { %v2790_v45 = vmul.f32 %v5340_v43, %v5332_v30  ;;  %5167 = vmatprep.subr.bf16.mxu0 %v5472_v3  ;;  %v4707_v43 = vld [vmem:[%s6293_s10] ss:$0 sm:$0xff]  ;;  %s6304_s10 = sld [smem:[#allocation7_spill]] }
 0xe51   : > { %4989 = vmatmul.mubr.msk.f32.vlgmr.msra.gmra.mrb[20].mxu1 %vm1342_vm2, %v2790_v45 }
 0xe52   : > { %4997 = vmatpush3.msra.mxu1 %v3022_v46  ;;  %4998 = vmatprep.mubr.msk.f32.mxu1 %vm5473_vm0, %v5474_v6 }
 0xe53   : > { %v5342_v47 = vpop.eup %5341  ;;  %5173 = vmatprep.subr.bf16.mxu1 %v5472_v3 }
 0xe54   : > { %v5344_v48 = vpop.eup %5343  ;;  %v2791_v49 = vmul.f32 %v5342_v47, %v5334_v32  ;;  %v2317_v32 = vld [vmem:[%s6290_s5 + $0x8] sm:$0xff]  ;;  %v4708_v47 = vld [vmem:[%s6294_s19] ss:$0 sm:$0xff]  ;;  %s6297_s19 = sld [smem:[#allocation24_spill]] }
 0xe55   : > { %v2792_v50 = vmul.f32 %v5344_v48, %v5336_v33  ;;  %v5174_v33 = vpack.c.bf16 %v2317_v32, %v2316_v31 }
 0xe56   : > { %4994 = vmatmul.mubr.msk.f32.vlgmr.msra.gmra.mrb[16].mxu0 %vm1342_vm2, %v2791_v49 }
 0xe57   : > { %4999 = vmatmul.mubr.msk.f32.vlgmr.msra.gmra.mrb[22].mxu1 %vm1342_vm2, %v2792_v50  ;;  %5009 = vmatprep.mubr.msk.f32.mxu0 %vm5473_vm0, %v5474_v6 }
 0xe58   : > { %5020 = vmatprep.mubr.msk.f32.mxu1 %vm5473_vm0, %v5474_v6  ;;  %5169 = vmatpush3.bf16.msra.mxu0 %v5168_v54 }
 0xe59   : > { %5170 = vmatprep.subr.bf16.mxu0 %v5472_v3  ;;  %5175 = vmatpush3.bf16.msra.mxu1 %v5174_v33 }
 0xe5a   : > { %5176 = vmatprep.subr.bf16.mxu1 %v5472_v3 }
 0xe5c   : > { %5172 = vmatpush3.bf16.msra.mxu0 %v5171_v57 }
 0xe5d   : > { %5179 = vmatprep.subr.bf16.mxu0 %v5472_v3  ;;  %5178 = vmatpush3.bf16.msra.mxu1 %v5177_v36 }
 0xe5e   : > { %5034 = vmatprep.subr.mxu1 %v5474_v6 }
 0xec0   : > { %v2865_v8 = vpop.f32.mrb[14].mxu0 }
 0xec1   : > { %v4985_v51 = vpop.f32.mrb[15].mxu0 }
 0xf24   : > { %v2941_v58 = vpop.f32.mrb[20].mxu1 }
 0xf25   : > { %3098 = vrot.lane.b32.xlu1 %v2941_v58, %s6285_s6  ;;  %v4990_v59 = vpop.f32.mrb[21].mxu1 }
 0xf29   : > { %v3017_v60 = vpop.f32.mrb[16].mxu0 }
 0xf2a   : > { %v3093_v61 = vpop.f32.mrb[22].mxu1  ;;  %3102 = vrot.lane.b32.xlu0 %v3017_v60, %s6286_s8  ;;  %v4995_v62 = vpop.f32.mrb[17].mxu0 }
 0xf2b   : > { %3106 = vrot.lane.b32.xlu1 %v3093_v61, %s6287_s9  ;;  %v5000_v63 = vpop.f32.mrb[23].mxu1 }
 0xf97   : > { %v3099_v0 = vpop.permute.xlu1 %3098 }
 0xf98   : > { %v3109_v4 = vsel %vm1342_vm2, %v2865_v8, %v3099_v0 }
 0xf9c   : > { %v3103_v5 = vpop.permute.xlu0 %3102 }
 0xf9d   : > { %v3107_v9 = vpop.permute.xlu1 %3106  ;;  %v3110_v10 = vsel %vm2006_vm3, %v3109_v4, %v3103_v5 }
 0xf9e   : > { %v3111_v13 = vsel %vm2008_vm4, %v3110_v10, %v3107_v9 }
 0xf9f   : > { %5010 = vmatmul.mubr.msk.f32.vlgmr.msra.gmra.mrb[18].mxu0 %vm1245_vm1, %v3111_v13 }
 0xfa0   : > { %5181 = vmatpush3.bf16.msra.mxu0 %v5180_v7  ;;  %5031 = vmatprep.mubr.msk.f32.mxu0 %vm5473_vm0, %v5474_v6 }
 0xfa1   : > { %5182 = vmatprep.subr.bf16.mxu0 %v5472_v3 }
 0xfa4   : > { %5184 = vmatpush3.bf16.msra.mxu0 %v5183_v14 }
 0xfa5   : > { %5044 = vmatprep.subr.mxu0 %v5474_v6 }
 0xfa7   : > { %5032 = vmatmul.mubr.msk.f32.vlgmr.msra.gmra.mrb[20].mxu0 %vm1245_vm1, %v5908_v44 }
 0xfa8   : > { %5046 = vmatprep.mubr.msk.f32.mxu0 %vm5473_vm0, %v5474_v6 }
0x1072   : > { %v3187_v16 = vpop.f32.mrb[18].mxu0 }
0x1073   : > { %v3188_v17 = vadd.f32 %v4704_v15, %v3187_v16  ;;  %v5011_v18 = vpop.f32.mrb[19].mxu0 }
0x1075   : > { %v3191_v24 = vadd.f32 %v3188_v17, %v5908_v44 }
0x1077   : > { %v3192_v19 = vsel %vm1245_vm1, %v3191_v24, 0.0 }
0x1078   : > { %3193 = vadd.xlane.f32.xlu0 %v3192_v19 }
0x107a   : > { %v3370_v20 = vpop.f32.mrb[20].mxu0 }
0x107b   : > { %v5033_v21 = vpop.f32.mrb[21].mxu0  ;;  %v6014_v23 = vadd.f32 %v4710_v22, %v3370_v20 }
0x108e   : > { %3383 = vrot.lane.b32.xlu0 %v6014_v23, %s6279_s1 }
0x1092   : > { %3385 = vrot.lane.b32.xlu0 %v6014_v23, %s6291_s17 }
0x1105   : > { %v3194_v25 = vpop.xlane.xlu0 %3193 }
0x1106   : > { %v3195_v26 = vmul.f32 0.03125, %v3194_v25 }
0x1108   : > { %v3196_v44 = vsub.f32 %v3191_v24, %v3195_v26 }
0x1109   : > { %v6020_v27 = vpop.permute.xlu0 %3383 }
0x110a   : > { %v3197_v28 = vmul.f32 %v3196_v44, %v3196_v44 }
0x110c   : > { %v3198_v29 = vsel %vm1245_vm1, %v3197_v28, 0.0 }
0x110d   : > { %3199 = vadd.xlane.f32.xlu1 %v3198_v29  ;;  %v6023_v30 = vpop.permute.xlu0 %3385 }
0x110e   : > { %5045 = vmatpush3.xpose.msk.msra.mxu0 %vm1342_vm2, %v6023_v30 }
0x110f   : > { %5054 = vmatprep.subr.mxu0 %v5474_v6 }
0x111e   : > { %3387 = vrot.lane.b32.xlu1 %v6014_v23, %s6280_s3 }
0x119a   : > { %v3200_v37 = vpop.xlane.xlu1 %3199 }
0x119b   : > { %v3201_v38 = vmul.f32 0.03125, %v3200_v37 }
0x119d   : > { %v3202_v39 = vadd.f32 1e-05, %v3201_v38 }
0x119e   : > { %v3388_v51 = vpop.permute.xlu1 %3387 }
0x119f   : > { %5345 = vrsqrt.f32 %v3202_v39 }
0x11a9   : > { %v5346_v41 = vpop.eup %5345 }
0x11aa   : > { %v3210_v42 = vmul.f32 %v5346_v41, %v4706_v40 }
0x11ac   : > { %v3211_v45 = vmul.f32 %v3210_v42, %v3196_v44 }
0x11ae   : > { %v6038_v46 = vadd.f32 %v4707_v43, %v3211_v45 }
0x11b0   : > { %5021 = vmatmul.mubr.msk.f32.vlgmr.msra.gmra.mrb[24].mxu1 %vm1245_vm1, %v6038_v46 }
0x11b1   : > { %5035 = vmatpush3.xpose.msk.msra.mxu1 %vm1342_vm2, %v6014_v23  ;;  %5036 = vmatprep.mubr.msk.f32.mxu1 %vm5473_vm0, %v5474_v6 }
0x11b2   : > { %5039 = vmatprep.subr.mxu1 %v5474_v6 }
0x1283   : > { %v3294_v48 = vpop.f32.mrb[24].mxu1 }
0x1284   : > { %v3295_v49 = vadd.f32 %v4708_v47, %v3294_v48  ;;  %v5022_v50 = vpop.f32.mrb[25].mxu1 }
0x1286   : > { %v3374_v8 = vmul.f32 0.35355338, %v3295_v49 }
0x1288   : > { %3376 = vrot.lane.b32.xlu1 %v3374_v8, %s6279_s1  ;;  %3378 = vrot.lane.b32.xlu0 %v3374_v8, %s6291_s17  ;;  %s6295_s17 = sld [smem:[#allocation22_spill]]  ;;  %s6301_s1 = sld [smem:[#allocation25_spill]] }
0x1289   : > { %5037 = vmatmul.mubr.msk.f32.vlgmr.msra.gmra.mrb[26].mxu1 %vm1342_vm2, %v3374_v8 }
0x128a   : > { %5040 = vmatpush3.xpose.msk.msra.mxu1 %vm1342_vm2, %v6020_v27  ;;  %5041 = vmatprep.mubr.msk.f32.mxu1 %vm5473_vm0, %v5474_v6 }
0x128b   : > { %5049 = vmatprep.subr.mxu1 %v5474_v6 }
0x128c   : > { %3380 = vrot.lane.b32.xlu1 %v3374_v8, %s6280_s3  ;;  %s6296_s3 = sld [smem:[#allocation23_spill]] }
0x128e   : > { %v2326_v41 = vld [vmem:[%s6295_s17] sm:$0xff]  ;;  %v2327_v42 = vld [vmem:[%s6295_s17 + $0x8] sm:$0xff]  ;;  %v2328_v48 = vld [vmem:[%s6295_s17 + $0x10] sm:$0xff] }
0x128f   : > { %v5186_v43 = vpack.c.bf16 %v2327_v42, %v2326_v41  ;;  %v2329_v49 = vld [vmem:[%s6295_s17 + $0x18] sm:$0xff] }
0x1290   : > { %v5189_v50 = vpack.c.bf16 %v2329_v49, %v2328_v48 }
0x12fa   : > { %v3377_v52 = vpop.permute.xlu1 %3376  ;;  %v3379_v53 = vpop.permute.xlu0 %3378 }
0x12fb   : > { %5042 = vmatmul.mubr.msk.f32.vlgmr.msra.gmra.mrb[28].mxu1 %vm1342_vm2, %v3377_v52  ;;  %5047 = vmatmul.mubr.msk.f32.vlgmr.msra.gmra.mrb[22].mxu0 %vm1342_vm2, %v3379_v53 }
0x12fc   : > { %5050 = vmatpush3.xpose.msk.msra.mxu1 %vm1342_vm2, %v3388_v51  ;;  %5051 = vmatprep.mubr.msk.f32.mxu1 %vm5473_vm0, %v5474_v6 }
0x12fd   : > { %5056 = vmatprep.mubr.msk.f32.mxu0 %vm5473_vm0, %v5474_v6  ;;  %5059 = vmatprep.subr.mxu1 %v5474_v6 }
0x12fe   : > { %v3381_v54 = vpop.permute.xlu1 %3380 }
0x12ff   : > { %5052 = vmatmul.mubr.msk.f32.vlgmr.msra.gmra.mrb[30].mxu1 %vm1342_vm2, %v3381_v54 }
0x1300   : > { %5061 = vmatprep.mubr.msk.f32.mxu1 %vm5473_vm0, %v5474_v6 }
0x135c   : > { %v3459_v55 = vpop.f32.mrb[26].mxu1 }
0x135d   : > { %v5038_v56 = vpop.f32.mrb[27].mxu1  ;;  %v3685_v57 = vsel %vm1342_vm2, %v3459_v55, -inf }
0x135e   : > { %3686 = vmax.xlane.f32.xlu0 %v3685_v57 }
0x13ce   : > { %v3533_v58 = vpop.f32.mrb[28].mxu1  ;;  %v3607_v59 = vpop.f32.mrb[22].mxu0 }
0x13cf   : > { %v5043_v60 = vpop.f32.mrb[29].mxu1  ;;  %v5048_v61 = vpop.f32.mrb[23].mxu0  ;;  %v3688_v62 = vsel %vm1342_vm2, %v3533_v58, -inf  ;;  %v3691_v63 = vsel %vm1342_vm2, %v3607_v59, -inf }
0x13d0   : > { %3689 = vmax.xlane.f32.xlu1 %v3688_v62  ;;  %3692 = vmax.xlane.f32.xlu0 %v3691_v63  ;;  %v4724_v62 = vld [vmem:[%s6296_s3] ss:$0 sm:$0xff]  ;;  %s6305_s3 = sld [smem:[#allocation32_spill]] }
0x13d2   : > { %v3681_v0 = vpop.f32.mrb[30].mxu1 }
0x13d3   : > { %v5053_v1 = vpop.f32.mrb[31].mxu1  ;;  %v3694_v2 = vsel %vm1342_vm2, %v3681_v0, -inf }
0x13d4   : > { %3695 = vmax.xlane.f32.xlu0 %v3694_v2 }
0x13e1   : > { %3729 = vrot.lane.b32.xlu1 %v6014_v23, %s6281_s7 }
0x13eb   : > { %v3687_v4 = vpop.xlane.xlu0 %3686 }
0x13ec   : > { %v3697_v5 = vsub.f32 %v3459_v55, %v3687_v4 }
0x13ee   : > { %v3701_v7 = vmul.f32 1.442695, %v3697_v5 }
0x13f0   : > { %5347 = vpow2.f32 %v3701_v7 }
0x13fa   : > { %v5348_v9 = vpop.eup %5347 }
0x13fb   : > { %v3709_v10 = vsel %vm1342_vm2, %v5348_v9, 0.0 }
0x1405   : > { %3710 = vadd.xlane.f32.xlu1 %v3709_v10 }
0x145d   : > { %v3690_v11 = vpop.xlane.xlu1 %3689  ;;  %v3693_v12 = vpop.xlane.xlu0 %3692 }
0x145e   : > { %v3698_v13 = vsub.f32 %v3533_v58, %v3690_v11  ;;  %v3699_v14 = vsub.f32 %v3607_v59, %v3693_v12  ;;  %v2331_v12 = vld [vmem:[%s6297_s19] sm:$0xff] }
0x1460   : > { %v3703_v15 = vmul.f32 1.442695, %v3698_v13  ;;  %v3705_v16 = vmul.f32 1.442695, %v3699_v14  ;;  %v2332_v13 = vld [vmem:[%s6297_s19 + $0x8] sm:$0xff] }
0x1461   : > { %v3730_v17 = vpop.permute.xlu1 %3729  ;;  %v3696_v18 = vpop.xlane.xlu0 %3695  ;;  %v5192_v14 = vpack.c.bf16 %v2332_v13, %v2331_v12 }
0x1462   : > { %5349 = vpow2.f32 %v3703_v15  ;;  %v3700_v24 = vsub.f32 %v3681_v0, %v3696_v18  ;;  %5055 = vmatpush3.msra.mxu0 %v3730_v17  ;;  %v2333_v15 = vld [vmem:[%s6297_s19 + $0x10] sm:$0xff] }
0x1463   : > { %5351 = vpow2.f32 %v3705_v16  ;;  %5064 = vmatprep.subr.mxu0 %v5474_v6 }
0x1464   : > { %v3707_v19 = vmul.f32 1.442695, %v3700_v24 }
0x1466   : > { %5353 = vpow2.f32 %v3707_v19 }
0x146c   : > { %v5350_v20 = vpop.eup %5349 }
0x146d   : > { %v5352_v21 = vpop.eup %5351  ;;  %v3712_v22 = vsel %vm1342_vm2, %v5350_v20, 0.0 }
0x146e   : > { %3713 = vadd.xlane.f32.xlu0 %v3712_v22  ;;  %v3715_v23 = vsel %vm1342_vm2, %v5352_v21, 0.0 }
0x146f   : > { %3716 = vadd.xlane.f32.xlu1 %v3715_v23 }
0x1470   : > { %v5354_v25 = vpop.eup %5353 }
0x1471   : > { %v3718_v26 = vsel %vm1342_vm2, %v5354_v25, 0.0 }
0x1472   : > { %3719 = vadd.xlane.f32.xlu0 %v3718_v26 }
0x1480   : > { %3881 = vrot.lane.b32.xlu1 %v6023_v30, %s6281_s7 }
0x1484   : > { %3957 = vrot.lane.b32.xlu1 %v3388_v51, %s6281_s7 }
0x1488   : > { %3805 = vrot.lane.b32.xlu0 %v6020_v27, %s6281_s7  ;;  %s6302_s7 = sld [smem:[#allocation27_spill]] }
0x148e   : > { %v4730_v42 = vld [vmem:[%s6302_s7] ss:$0 sm:$0xff]  ;;  %s1195_s7 = sand.u32 1, %s5423_s23  }
0x1492   : > { %v3711_v44 = vpop.xlane.xlu1 %3710 }
0x1493   : > { %5355 = vrcp.f32 %v3711_v44 }
0x149d   : > { %v5356_v28 = vpop.eup %5355 }
0x149e   : > { %v3725_v29 = vmul.f32 %v5356_v28, %v5348_v9 }
0x14a0   : > { %5057 = vmatmul.mubr.msk.f32.vlgmr.msra.gmra.mrb[24].mxu0 %vm1342_vm2, %v3725_v29 }
0x14a1   : > { %5066 = vmatprep.mubr.msk.f32.mxu0 %vm5473_vm0, %v5474_v6 }
0x14fb   : > { %v3714_v31 = vpop.xlane.xlu0 %3713 }
0x14fc   : > { %v3717_v32 = vpop.xlane.xlu1 %3716  ;;  %5357 = vrcp.f32 %v3714_v31 }
0x14fd   : > { %5359 = vrcp.f32 %v3717_v32 }
0x14ff   : > { %v3720_v33 = vpop.xlane.xlu0 %3719 }
0x1500   : > { %v3882_v30 = vpop.permute.xlu1 %3881  ;;  %5361 = vrcp.f32 %v3720_v33 }
0x1501   : > { %5065 = vmatpush3.msra.mxu0 %v3882_v30 }
0x1502   : > { %5185 = vmatprep.subr.bf16.mxu0 %v5472_v3 }
0x1503   : > { %v3806_v27 = vpop.permute.xlu0 %3805 }
0x1504   : > { %5060 = vmatpush3.msra.mxu1 %v3806_v27  ;;  %v3958_v38 = vpop.permute.xlu1 %3957 }
0x1505   : > { %5069 = vmatprep.subr.mxu1 %v5474_v6 }
0x1506   : > { %v5358_v34 = vpop.eup %5357 }
0x1507   : > { %v5360_v35 = vpop.eup %5359  ;;  %v3726_v36 = vmul.f32 %v5358_v34, %v5350_v20 }
0x1508   : > { %v3727_v37 = vmul.f32 %v5360_v35, %v5352_v21 }
0x1509   : > { %5062 = vmatmul.mubr.msk.f32.vlgmr.msra.gmra.mrb[32].mxu1 %vm1342_vm2, %v3726_v36 }
0x150a   : > { %v5362_v39 = vpop.eup %5361  ;;  %5067 = vmatmul.mubr.msk.f32.vlgmr.msra.gmra.mrb[26].mxu0 %vm1342_vm2, %v3727_v37  ;;  %5070 = vmatpush3.msra.mxu1 %v3958_v38  ;;  %v4728_v37 = vld [vmem:[%s6301_s1] ss:$0 sm:$0xff]  ;;  %s6307_s1 = sld [smem:[#allocation33_spill]] }
0x150b   : > { %v3728_v40 = vmul.f32 %v5362_v39, %v5354_v25  ;;  %5071 = vmatprep.mubr.msk.f32.mxu1 %vm5473_vm0, %v5474_v6  ;;  %5082 = vmatprep.mubr.msk.f32.mxu0 %vm5473_vm0, %v5474_v6 }
0x150c   : > { %5191 = vmatprep.subr.bf16.mxu1 %v5472_v3  ;;  %5187 = vmatpush3.bf16.msra.mxu0 %v5186_v43 }
0x150d   : > { %5072 = vmatmul.mubr.msk.f32.vlgmr.msra.gmra.mrb[34].mxu1 %vm1342_vm2, %v3728_v40  ;;  %5188 = vmatprep.subr.bf16.mxu0 %v5472_v3 }
0x150e   : > { %5093 = vmatprep.mubr.msk.f32.mxu1 %vm5473_vm0, %v5474_v6  ;;  %5193 = vmatpush3.bf16.msra.mxu1 %v5192_v14 }
0x150f   : > { %5194 = vmatprep.subr.bf16.mxu1 %v5472_v3 }
0x1510   : > { %5190 = vmatpush3.bf16.msra.mxu0 %v5189_v50 }
0x1511   : > { %5197 = vmatprep.subr.bf16.mxu0 %v5472_v3 }
0x1573   : > { %v3801_v45 = vpop.f32.mrb[24].mxu0 }
0x1574   : > { %v5058_v47 = vpop.f32.mrb[25].mxu0 }
0x15dc   : > { %v3877_v8 = vpop.f32.mrb[32].mxu1 }
0x15dd   : > { %v3953_v51 = vpop.f32.mrb[26].mxu0  ;;  %4034 = vrot.lane.b32.xlu0 %v3877_v8, %s6285_s6  ;;  %v5063_v52 = vpop.f32.mrb[33].mxu1  ;;  %s6300_s6 = sld [smem:[#allocation31_spill]] }
0x15de   : > { %4038 = vrot.lane.b32.xlu1 %v3953_v51, %s6286_s8  ;;  %v5068_v53 = vpop.f32.mrb[27].mxu0  ;;  %s6299_s8 = sld [smem:[#allocation30_spill]] }
0x15e0   : > { %v4029_v54 = vpop.f32.mrb[34].mxu1 }
0x15e1   : > { %4042 = vrot.lane.b32.xlu0 %v4029_v54, %s6287_s9  ;;  %v5073_v55 = vpop.f32.mrb[35].mxu1  ;;  %s6298_s9 = sld [smem:[#allocation26_spill]]  ;;  %v4342_v54 = vld [vmem:[%s6303_s14] sm:$0xff] }
0x15e2   : > { %v4343_v55 = vld [vmem:[%s6303_s14 + $0x8] sm:$0xff] }
0x15e3   : > { %v4727_v33 = vld [vmem:[%s6300_s6] ss:$0 sm:$0xff] }
0x15e4   : > { %v4726_v29 = vld [vmem:[%s6299_s8] ss:$0 sm:$0xff]  ;;  %s6306_s8 = sshll.u32 %s5750_s18, 3 }
0x15e5   : > { %s1207_s6 = scalar_lea.vmem %s6304_s10, %s6306_s8  ;;  %s4737_s10 = sshll.u32 %s5711_s0, 4 }
0x15e6   : > { %s5484_s0 = smov [#allocation2]  }
0x15e7   : > { %v2336_v17 = vld [vmem:[%s6298_s9] sm:$0xff]  ;;  %v2337_v18 = vld [vmem:[%s6298_s9 + $0x8] sm:$0xff]  ;;  %v2338_v24 = vld [vmem:[%s6298_s9 + $0x10] sm:$0xff] }
0x15e8   : > { %v5198_v19 = vpack.c.bf16 %v2337_v18, %v2336_v17  ;;  %v2339_v20 = vld [vmem:[%s6298_s9 + $0x18] sm:$0xff]  ;;  %v2340_v22 = vld [vmem:[%s6298_s9 + $0x20] sm:$0xff]  ;;  %v2341_v23 = vld [vmem:[%s6298_s9 + $0x28] sm:$0xff] }
0x15e9   : > { %v5201_v21 = vpack.c.bf16 %v2339_v20, %v2338_v24  ;;  %v5204_v25 = vpack.c.bf16 %v2341_v23, %v2340_v22  ;;  %v2342_v34 = vld [vmem:[%s6298_s9 + $0x30] sm:$0xff]  ;;  %v2343_v35 = vld [vmem:[%s6298_s9 + $0x38] sm:$0xff]  ;;  %v4734_v17 = vld [vmem:[%s5673_s27] ss:$0 sm:$0xff] }
0x15ea   : > { %v5207_v36 = vpack.c.bf16 %v2343_v35, %v2342_v34 }
0x164f   : > { %v4035_v56 = vpop.permute.xlu0 %4034 }
0x1650   : > { %v4045_v57 = vsel %vm1342_vm2, %v3801_v45, %v4035_v56  ;;  %v4039_v58 = vpop.permute.xlu1 %4038  ;;  %v5210_v56 = vpack.c.bf16 %v4343_v55, %v4342_v54 }
0x1651   : > { %v4046_v59 = vsel %vm2006_vm3, %v4045_v57, %v4039_v58  ;;  %v4344_v57 = vld [vmem:[%s6303_s14 + $0x10] sm:$0xff]  ;;  %v4345_v58 = vld [vmem:[%s6303_s14 + $0x18] sm:$0xff] }
0x1653   : > { %v4043_v60 = vpop.permute.xlu0 %4042 }
0x1654   : > { %v4047_v61 = vsel %vm2008_vm4, %v4046_v59, %v4043_v60  ;;  %v5213_v59 = vpack.c.bf16 %v4345_v58, %v4344_v57  ;;  %v1210_v60 = vld [vmem:[%s1207_s6] sm:$0xff]  ;;  %s6167_s6 = scalar_lea.hbm %s5688_s12, %s4737_s10 }
0x1655   : > { %5083 = vmatmul.mubr.msk.f32.vlgmr.msra.gmra.mrb[28].mxu0 %vm1245_vm1, %v4047_v61  ;;  %v5483_v61 = vmov 0  }
0x1656   : > { %5112 = vmatprep.mubr.msk.f32.mxu0 %vm5473_vm0, %v5474_v6  ;;  %5199 = vmatpush3.bf16.msra.mxu0 %v5198_v19 }
0x1657   : > { %5200 = vmatprep.subr.bf16.mxu0 %v5472_v3  ;;  %5307 = vset.pattern.permute.xlu1 %v5483_v61 }
0x1658   : > { %5308 = vset.pattern.permute.xlu0 %v5483_v61 }
0x165a   : > { %5202 = vmatpush3.bf16.msra.mxu0 %v5201_v21 }
0x165b   : > { %5203 = vmatprep.subr.bf16.mxu0 %v5472_v3 }
0x165e   : > { %5205 = vmatpush3.bf16.msra.mxu0 %v5204_v25 }
0x165f   : > { %5206 = vmatprep.subr.bf16.mxu0 %v5472_v3 }
0x1662   : > { %5208 = vmatpush3.bf16.msra.mxu0 %v5207_v36 }
0x1728   : > { %v4123_v63 = vpop.f32.mrb[28].mxu0 }
0x1729   : > { %v4124_v0 = vadd.f32 %v4724_v62, %v4123_v63  ;;  %v5084_v1 = vpop.f32.mrb[29].mxu0  ;;  %v4442_v62 = vsel %vm4441_vm6, %v1210_v60, 0.0 }
0x172b   : > { %v4127_v2 = vadd.f32 %v4124_v0, %v6038_v46  ;;  %v2334_v46 = vld [vmem:[%s6297_s19 + $0x18] sm:$0xff] }
0x172c   : > { %v5195_v16 = vpack.c.bf16 %v2334_v46, %v2333_v15 }
0x172d   : > { %v4128_v4 = vsel %vm1245_vm1, %v4127_v2, 0.0 }
0x172e   : > { %4129 = vadd.xlane.f32.xlu1 %v4128_v4  ;;  %5196 = vmatpush3.bf16.msra.mxu1 %v5195_v16  ;;  %v4347_v16 = vld [vmem:[%s6308_s4] sm:$0xff]  ;;  %s5373_s4 = sshll.u32 %s5484_s0, 4  ;;  %s5374_s4 = int_to_ptr.vmem [resolvable:$false] %s5373_s4 }
0x172f   : > { %5209 = vmatprep.subr.bf16.mxu1 %v5472_v3  ;;  %s5375_s5 = scalar_lea.vmem %s5374_s4, 32 }
0x17bb   : > { %v4130_v5 = vpop.xlane.xlu1 %4129 }
0x17bc   : > { %v4131_v7 = vmul.f32 0.03125, %v4130_v5  ;;  %v4733_v5 = vld [vmem:[%s6307_s1] ss:$0 sm:$0xff]  ;;  %s4532_s1 = scalar_lea.sflag [#allocation3], %s1195_s7 }
0x17be   : > { %v4132_v9 = vsub.f32 %v4127_v2, %v4131_v7 }
0x17c0   : > { %v4133_v10 = vmul.f32 %v4132_v9, %v4132_v9 }
0x17c2   : > { %v4134_v11 = vsel %vm1245_vm1, %v4133_v10, 0.0 }
0x17c3   : > { %4135 = vadd.xlane.f32.xlu0 %v4134_v11 }
0x1850   : > { %v4136_v26 = vpop.xlane.xlu0 %4135 }
0x1851   : > { %v4137_v44 = vmul.f32 0.03125, %v4136_v26 }
0x1853   : > { %v4138_v28 = vadd.f32 1e-05, %v4137_v44 }
0x1855   : > { %5363 = vrsqrt.f32 %v4138_v28 }
0x185f   : > { %v5364_v31 = vpop.eup %5363 }
0x1860   : > { %v4146_v32 = vmul.f32 %v5364_v31, %v4726_v29 }
0x1862   : > { %v4147_v30 = vmul.f32 %v4146_v32, %v4132_v9 }
0x1864   : > { %v4154_v27 = vadd.f32 %v4727_v33, %v4147_v30  ;;  %v4348_v30 = vld [vmem:[%s5683_s13] sm:$0x1] }
0x1866   : > { %5094 = vmatmul.mubr.msk.f32.vlgmr.msra.gmra.mrb[36].mxu1 %vm1245_vm1, %v4154_v27 }
0x1867   : > { %5123 = vmatprep.mubr.msk.f32.mxu1 %vm5473_vm0, %v5474_v6  ;;  %5211 = vmatpush3.bf16.msra.mxu1 %v5210_v56 }
0x1868   : > { %5212 = vmatprep.subr.bf16.mxu1 %v5472_v3  ;;  %v4732_v3 = vld [vmem:[%s6305_s3] ss:$0 sm:$0xff]  ;;  %s1196_s3 = scalar_lea.vmem [#allocation2], %s1195_s7 }
0x1869   : > { %s4544_s8 = sshll.u32 %s1196_s3, 4  ;;  %s6169_s8 = int_to_ptr.vmem [resolvable:$true] %s4544_s8 }
0x186a   : > { %p5376_p0 = scmp.lt.s32.totalorder %s6169_s8, %s5374_s4 }
0x186b   : > { %5214 = vmatpush3.bf16.msra.mxu1 %v5213_v59 }
0x186c   : > { %5126 = vmatprep.subr.mxu1 %v5474_v6 }
0x1939   : > { %v4230_v38 = vpop.f32.mrb[36].mxu1 }
0x193a   : > { %v4231_v39 = vadd.f32 %v4728_v37, %v4230_v38  ;;  %v5095_v40 = vpop.f32.mrb[37].mxu1 }
0x193c   : > { %v4234_v41 = vmax.f32 %v4231_v39, 0.0 }
0x193e   : > { %5113 = vmatmul.mubr.msk.f32.vlgmr.msra.gmra.mrb[30].mxu0 %vm2204_vm5, %v4234_v41 }
0x1a11   : > { %v4310_v43 = vpop.f32.mrb[30].mxu0 }
0x1a12   : > { %v4311_v45 = vadd.f32 %v4730_v42, %v4310_v43  ;;  %v5114_v47 = vpop.f32.mrb[31].mxu0 }
0x1a14   : > { %v4314_v48 = vadd.f32 %v4311_v45, %v4154_v27 }
0x1a16   : > { %v4315_v49 = vsel %vm1245_vm1, %v4314_v48, 0.0 }
0x1a17   : > { %4316 = vadd.xlane.f32.xlu0 %v4315_v49 }
0x1a1b   : > { %4443 = vadd.xlane.f32.xlu0 %v4442_v62 }
0x1aa4   : > { %v4317_v50 = vpop.xlane.xlu0 %4316 }
0x1aa5   : > { %v4318_v8 = vmul.f32 0.03125, %v4317_v50 }
0x1aa7   : > { %v4319_v51 = vsub.f32 %v4314_v48, %v4318_v8 }
0x1aa8   : > { %v4444_v10 = vpop.xlane.xlu0 %4443 }
0x1aa9   : > { %v4320_v52 = vmul.f32 %v4319_v51, %v4319_v51  ;;  %v4445_v11 = vrot.slane %v4444_v10, 4 }
0x1aab   : > { %v4321_v53 = vsel %vm1245_vm1, %v4320_v52, 0.0  ;;  %v4446_v12 = vadd.f32 %v4445_v11, %v4444_v10 }
0x1aac   : > { %4322 = vadd.xlane.f32.xlu1 %v4321_v53 }
0x1aad   : > { %v4447_v13 = vrot.slane %v4446_v12, 2 }
0x1aaf   : > { %v4448_v14 = vadd.f32 %v4447_v13, %v4446_v12 }
0x1ab1   : > { %v4449_v15 = vrot.slane %v4448_v14, 1 }
0x1ab3   : > { %v4450_v46 = vadd.f32 %v4449_v15, %v4448_v14 }
0x1ab5   : > { %5215 = vpush %v4450_v46 }
0x1abd   : > { %4430 = vperm.xlu1 %5307, %v1210_v60  }
0x1ae6   : > { %s5216_s18 = spop %5215 }
0x1ae7   : > { %v4452_v18 = vstv %s5216_s18  ;;  %s5369_s18 = scalar_lea.vmem %s6169_s8, 16 }
0x1ae8   : > { %p5370_p11 = scmp.ne.s32.totalorder %s6169_s8, %s5369_s18  ;;  %p5377_p1 = scmp.lt.s32.totalorder %s5375_s5, %s5369_s18 }
0x1aea   : > { %p5371_p12 = pnand %p5370_p11, %p5728_p5  ;;  %p5378_p2 = por %p5377_p1, %p5376_p0 }
0x1aec   : > { %p5372_p13 = pneg %p5371_p12 }
0x1aee   : > { %p5379_p3 = pnand %p5378_p2, %p5372_p13 }
0x1b39   : > { %v4323_v63 = vpop.xlane.xlu1 %4322 }
0x1b3a   : > { %v4324_v0 = vmul.f32 0.03125, %v4323_v63 }
0x1b3c   : > { %v4325_v1 = vadd.f32 1e-05, %v4324_v0 }
0x1b3d   : > { %v4431_v19 = vpop.permute.xlu1 %4430 }
0x1b3e   : > { %5365 = vrsqrt.f32 %v4325_v1 }
0x1b48   : > { %v5366_v2 = vpop.eup %5365 }
0x1b49   : > { %v4333_v4 = vmul.f32 %v5366_v2, %v4732_v3 }
0x1b4b   : > { %v4334_v7 = vmul.f32 %v4333_v4, %v4319_v51 }
0x1b4d   : > { %v4341_v9 = vadd.f32 %v4733_v5, %v4334_v7 }
0x1b4f   : > { %5124 = vmatmul.mubr.msk.f32.vlgmr.msra.gmra.mrb[38].mxu1 %vm1245_vm1, %v4341_v9 }
0x1b50   : > { %5128 = vmatprep.mubr.msk.f32.mxu1 %vm5473_vm0, %v5474_v6  ;;  %5127 = vmatpush3.msra.mxu1 %v4347_v16  ;;  %v4453_v6 = vmax.f32 %v4452_v18, 1.0 }
0x1b52   : > { %5367 = vrcp.f32 %v4453_v6 }
0x1b5c   : > { %v5368_v32 = vpop.eup %5367 }
0x1c22   : > { %v4424_v24 = vpop.f32.mrb[38].mxu1 }
0x1c23   : > { %v4425_v20 = vadd.f32 %v4734_v17, %v4424_v24  ;;  %v5125_v21 = vpop.f32.mrb[39].mxu1 }
0x1c25   : > { %v4433_v22 = vmul.f32 %v4431_v19, %v4425_v20 }
0x1c27   : > { %v4434_v23 = vsel %vm1342_vm2, %v4433_v22, 0.0 }
0x1c28   : > { %v4435_v25 = vrot.slane %v4434_v23, 4 }
0x1c2a   : > { %v4436_v26 = vadd.f32 %v4435_v25, %v4434_v23 }
0x1c2c   : > { %v4437_v44 = vrot.slane %v4436_v26, 2 }
0x1c2e   : > { %v4438_v28 = vadd.f32 %v4437_v44, %v4436_v26 }
0x1c30   : > { %v4439_v29 = vrot.slane %v4438_v28, 1 }
0x1c32   : > { %v4440_v31 = vadd.f32 %v4439_v29, %v4438_v28 }
0x1c34   : > { %v4455_v33 = vmul.f32 %v5368_v32, %v4440_v31 }
0x1c36   : > { %5129 = vmatmul.mubr.msk.f32.vlgmr.msra.gmra.mrb[40].mxu1 %vm1342_vm2, %v4455_v33 }
0x1d09   : > { %v4525_v27 = vpop.f32.mrb[40].mxu1 }
0x1d0a   : > { %v4526_v34 = vadd.f32 %v4525_v27, %v4348_v30  ;;  %v5130_v35 = vpop.f32.mrb[41].mxu1 }
0x1d0c   : > { %4530 = vst.msk [vmem:[%s1196_s3] sm:$0x1] %vm4529_vm7, %v4526_v34 }
0x1d0d   : > { %5382 = shalt.err (!%p5379_p3)
}
0x1d0e   : > { %s5383_s7 = scalar_lea.hbm %s6167_s6, 16  ;;  %s5387_s10 = scalar_lea.hbm %s5688_s12, 32 }
0x1d0f   : > { %p5384_p4 = scmp.ne.s32.totalorder %s6167_s6, %s5383_s7  ;;  %p5388_p9 = scmp.lt.u32.totalorder %s6167_s6, %s5688_s12 }
0x1d10   : > { %p5389_p10 = scmp.lt.u32.totalorder %s5387_s10, %s5383_s7  ;;  %p5391_p12 = scmp.lt.u32.totalorder %s5383_s7, %s6167_s6 }
0x1d11   : > { %p5385_p7 = pnand %p5384_p4, %p5728_p5 }
0x1d12   : > { %p5390_p11 = por %p5389_p10, %p5388_p9 }
0x1d13   : > { %p5386_p8 = pneg %p5385_p7 }
0x1d14   : > { %p5392_p0 = por %p5391_p12, %p5390_p11 }
0x1d16   : > { %p5393_p13 = pnand %p5392_p0, %p5386_p8 }
0x1d18   : > { %5396 = shalt.err (!%p5393_p13)
}
0x1d19   : > { %5217 = dma.vmem_to_hbm [thread:$0]  (%p5728_p5), %s6169_s8, 16, %s6167_s6, %s4532_s1  }
0x1d1a PF: > { %p5223_p1 = scmp.ge.s32.totalorder %s5431_s28, 2  ;;  %s4556_s5 = sand.u32 1, %s5419_s22  }
0x1d1b   : > { %s4557_s4 = scalar_lea.sflag [#allocation3], %s4556_s5 }
0x1d1c   : > { %p5220_p2 = pnand %p5223_p1, %p5732_p6 }
0x1d1e   : > { %5414 = dma.done.wait (!%p5220_p2), %s4557_s4, 16  }
0x1d1f   : > { %5416 = vsyncadd (!%p5220_p2), %s4557_s4, 4294967280  ;;  %p89_p3 = scmp.ge.s32.totalorder %s5715_s2, 4   ;;  %s6309_s22 = smov %s5423_s23 }
0x1d20   : > { %s6310_s23 = smov %s5427_s26  ;;  %s6311_s26 = smov %s5726_s11 }
0x1d21   : > { %s6312_s28 = smov %s5715_s2  ;;  %91 = sbr.rel (!%p89_p3) target bundleno = 79 (0x4f), region = 256 }
0x1d28   :  { %4561 = vsyncpa [#allocation3], 1 }
0x1d29   :  { %4563 = vsyncpa [#allocation3 + $0x1], 1 }

</bundles_post_ra>
